<compile_context>
chip_gen: v6e
topology: v6e:2x2x1
jax: 0.10.0
libtpu: 0.0.40
codegen_flags: <defaults>
</compile_context>

<pallas_src>
import functools

import jax
import jax.numpy as jnp
import numpy as np
from jax.experimental import pallas as pl
from jax.experimental.pallas import tpu as pltpu

MINUTE_INPUT_SIZE = 6
THIRTY_MIN_INPUT_SIZE = 4
OUTPUT_SIZE = 1
HIDDEN_CONV = 32
HIDDEN_FC = 64
KSIZE = 3


def _round_up(x, m):
    return ((x + m - 1) // m) * m


def _vmem_capacity_bytes():
    """Generation-aware VMEM capacity (v5e/v6e: 128 MiB, v7x: 64 MiB per core)."""
    try:
        info = pltpu.get_tpu_info()
        cap = int(getattr(info, "vmem_capacity_bytes", 0) or 0)
        if cap > 0:
            return cap
    except Exception:
        pass
    return 64 * 1024 * 1024  # conservative fallback (v7x-sized)


def _multiscale_kernel(xm_ref, x30_ref,
                       wm_ref, bm_ref,
                       wt_ref, bt_ref,
                       w1a_ref, w1b_ref, b1_ref,
                       w2_ref, b2_ref,
                       out_ref, *, lm, l30):
    btile = out_ref.shape[-1]

    def conv_branch(x_ref, w_ref, b_ref, length):
        # x_ref: (btile*(L+2), Cin) raw zero-padded rows; w_ref: (3, Cin, 32).
        # In-kernel "im2col": one small K=Cin matmul per tap over the full padded slab
        # (MXU has huge slack here), then recombine taps with shifted sublane slices.
        x = x_ref[...]
        zs = []
        for k in range(KSIZE):
            zk = jnp.dot(x, w_ref[k], preferred_element_type=jnp.float32)
            zs.append(zk.reshape(btile, length + 2, HIDDEN_CONV))
        y = (zs[0][:, 0:length, :]
             + zs[1][:, 1:length + 1, :]
             + zs[2][:, 2:length + 2, :])                     # (btile, L, 32)
        m = jnp.max(y, axis=1)                                # global max over L
        # bias + ReLU commute with the max (bias constant over L, ReLU monotone).
        return jnp.maximum(m + b_ref[...], 0.0)               # (btile, 32)

    out_m = conv_branch(xm_ref, wm_ref, bm_ref, lm)
    out_30 = conv_branch(x30_ref, wt_ref, bt_ref, l30)

    # concat([out_m, out_30]) @ W1  ==  out_m @ W1[:32] + out_30 @ W1[32:]
    fc_dtype = w1a_ref.dtype
    h = (jnp.dot(out_m.astype(fc_dtype), w1a_ref[...],
                 preferred_element_type=jnp.float32)
         + jnp.dot(out_30.astype(fc_dtype), w1b_ref[...],
                   preferred_element_type=jnp.float32)
         + b1_ref[...])
    h = jnp.maximum(h, 0.0)                                   # (btile, 64)

    # Final Linear(64, 1) as a reduction; lane-dense (1, btile) output block.
    o = jnp.sum(h.T * w2_ref[...], axis=0, keepdims=True)     # (1, btile)
    out_ref[...] = (o + b2_ref[...]).reshape(1, 1, btile).astype(out_ref.dtype)


def multiscale_cnn_forward(x_minute, x_30m, params, *, compute_dtype=jnp.float32):
    B, Lm, Cm = x_minute.shape
    _, L30, C30 = x_30m.shape
    itemsize = jnp.dtype(compute_dtype).itemsize

    # ---- batch-tile selection: fat tiles (amortize per-step cost), lane-dense output.
    b_tile = min(256, _round_up(B, 8))
    if b_tile > 128:
        b_tile = _round_up(b_tile, 128)        # keep the (1, b_tile) store unmasked

    # ---- corrected VMEM footprint: Cin lane-pads to 128, rows pad to 8 sublanes;
    #      2x double-buffered input blocks + f32 conv intermediates per branch.
    def footprint(bt):
        def branch(length):
            rows = _round_up(bt * (length + 2), 8)
            in_block = rows * 128 * itemsize
            z_bytes = rows * 128 * 4
            return 2 * in_block + 3 * z_bytes
        return branch(Lm) + branch(L30)

    vmem_cap = _vmem_capacity_bytes()
    vmem_limit = max(32 * 1024 * 1024,
                     min(int(0.75 * vmem_cap), 100 * 1024 * 1024))
    budget = vmem_limit - 8 * 1024 * 1024      # headroom for weights/output/misc
    # TODO(synk): replace this shrink with an L-chunk grid axis + running max scratch.
    while b_tile > 8 and footprint(b_tile) > budget:
        b_tile = max(8, _round_up(b_tile // 2, 8))

    b_pad = _round_up(B, b_tile)
    num_tiles = b_pad // b_tile

    # Raw (not im2col) inputs: zero-pad batch + seq(conv pad=1), flatten (b, L+2) rows.
    def prep(x, b_padded):
        b, length, c = x.shape
        xp = jnp.pad(x, ((0, b_padded - b), (1, 1), (0, 0)))
        return xp.reshape(b_padded * (length + 2), c).astype(compute_dtype)

    xm2d = prep(x_minute, b_pad)               # (b_pad*(Lm+2), 6)
    x302d = prep(x_30m, b_pad)                 # (b_pad*(L30+2), 4)

    wm = params["wm"].astype(compute_dtype)    # (3, 6, 32) per-tap conv weights
    wt = params["wt"].astype(compute_dtype)    # (3, 4, 32)
    w1a = params["w1"][:HIDDEN_CONV].astype(compute_dtype)
    w1b = params["w1"][HIDDEN_CONV:].astype(compute_dtype)

    args = (xm2d, x302d,
            wm, params["bm"],
            wt, params["bt"],
            w1a, w1b, params["b1"],
            params["w2"], params["b2"])

    const2 = lambda i: (0, 0)
    const3 = lambda i: (0, 0, 0)
    in_specs = [
        pl.BlockSpec((b_tile * (Lm + 2), Cm), lambda i: (i, 0)),     # raw minute tile
        pl.BlockSpec((b_tile * (L30 + 2), C30), lambda i: (i, 0)),   # raw 30-min tile
        pl.BlockSpec((KSIZE, Cm, HIDDEN_CONV), const3),              # conv weights (resident)
        pl.BlockSpec((1, HIDDEN_CONV), const2),
        pl.BlockSpec((KSIZE, C30, HIDDEN_CONV), const3),
        pl.BlockSpec((1, HIDDEN_CONV), const2),
        pl.BlockSpec((HIDDEN_CONV, HIDDEN_FC), const2),              # W1 halves
        pl.BlockSpec((HIDDEN_CONV, HIDDEN_FC), const2),
        pl.BlockSpec((1, HIDDEN_FC), const2),
        pl.BlockSpec((HIDDEN_FC, OUTPUT_SIZE), const2),              # W2 (64, 1)
        pl.BlockSpec((1, OUTPUT_SIZE), const2),                      # b2 (1, 1)
    ]
    out_spec = pl.BlockSpec((1, 1, b_tile), lambda i: (i, 0, 0))

    kernel = functools.partial(_multiscale_kernel, lm=Lm, l30=L30)
    out = pl.pallas_call(
        kernel,
        out_shape=jax.ShapeDtypeStruct((num_tiles, 1, b_tile), jnp.float32),
        grid_spec=pltpu.PrefetchScalarGridSpec(
            num_scalar_prefetch=0,
            grid=(num_tiles,),
            in_specs=in_specs,
            out_specs=out_spec,
        ),
        compiler_params=pltpu.CompilerParams(
            dimension_semantics=("parallel",),
            vmem_limit_bytes=int(vmem_limit),
        ),
    )(*args)

    return out.reshape(num_tiles * b_tile)[:B]   # squeeze(-1) + drop batch padding


def init_params(key):
    ks = jax.random.split(key, 10)

    def u(k, shape, fan_in):
        bound = 1.0 / np.sqrt(fan_in)
        return jax.random.uniform(k, shape, jnp.float32, -bound, bound)

    # Conv1d(Cin, 32, k=3): torch weight (32, Cin, 3) -> stored as (3, Cin, 32)
    wm_t = u(ks[0], (HIDDEN_CONV, MINUTE_INPUT_SIZE, 3), MINUTE_INPUT_SIZE * 3)
    wt_t = u(ks[1], (HIDDEN_CONV, THIRTY_MIN_INPUT_SIZE, 3), THIRTY_MIN_INPUT_SIZE * 3)
    params = {
        "wm": jnp.transpose(wm_t, (2, 1, 0)),                         # (3, 6, 32)
        "bm": u(ks[2], (1, HIDDEN_CONV), MINUTE_INPUT_SIZE * 3),      # (1, 32)
        "wt": jnp.transpose(wt_t, (2, 1, 0)),                         # (3, 4, 32)
        "bt": u(ks[3], (1, HIDDEN_CONV), THIRTY_MIN_INPUT_SIZE * 3),  # (1, 32)
        # Linear(64, 64): torch weight (64, 64) acts as x @ W.T -> store (in, out)
        "w1": u(ks[4], (2 * HIDDEN_CONV, HIDDEN_FC), 2 * HIDDEN_CONV),
        "b1": u(ks[5], (1, HIDDEN_FC), 2 * HIDDEN_CONV),
        "w2": u(ks[6], (HIDDEN_FC, OUTPUT_SIZE), HIDDEN_FC),          # (64, 1)
        "b2": u(ks[7], (1, OUTPUT_SIZE), HIDDEN_FC),                  # (1, 1)
    }
    return params


def reference_forward(x_minute, x_30m, p):
    """Pure-JAX reference with the original (torch) op ordering."""
    def branch(x, w_taps, bias):
        x_pad = jnp.pad(x, ((0, 0), (1, 1), (0, 0)))
        L = x.shape[1]
        y = sum(jnp.einsum("blc,co->blo", x_pad[:, k:k + L, :], w_taps[k])
                for k in range(3)) + bias[0][None, None, :]
        return jnp.max(jnp.maximum(y, 0.0), axis=1)

    om = branch(x_minute, p["wm"], p["bm"])
    o30 = branch(x_30m, p["wt"], p["bt"])
    c = jnp.concatenate([om, o30], axis=1)
    h = jnp.maximum(c @ p["w1"] + p["b1"][0], 0.0)
    return (h @ p["w2"] + p["b2"][0])[:, 0]


if __name__ == "__main__":
    key = jax.random.PRNGKey(0)
    k_p, k_xm, k_x30 = jax.random.split(key, 3)

    B, L_MINUTE, L_30M = 2, 16, 8
    x_minute = jax.random.normal(k_xm, (B, L_MINUTE, MINUTE_INPUT_SIZE), jnp.float32)
    x_30m = jax.random.normal(k_x30, (B, L_30M, THIRTY_MIN_INPUT_SIZE), jnp.float32)

    params = init_params(k_p)

    out = multiscale_cnn_forward(x_minute, x_30m, params)
    out = jax.block_until_ready(out)

    ref = jax.block_until_ready(reference_forward(x_minute, x_30m, params))
    np.testing.assert_allclose(np.asarray(out), np.asarray(ref), rtol=1e-4, atol=1e-4)
    assert out.shape == (B,)

    print("KERNEL_OK")
</pallas_src>

<mosaic_0001>
module attributes {stable_mosaic.version = 11 : i64} {
  func.func @_multiscale_kernel(%arg0: i32, %arg1: memref<144x6xf32, #tpu.memory_space<vmem>>, %arg2: memref<80x4xf32, #tpu.memory_space<vmem>>, %arg3: memref<3x6x32xf32, #tpu.memory_space<vmem>>, %arg4: memref<1x32xf32, #tpu.memory_space<vmem>>, %arg5: memref<3x4x32xf32, #tpu.memory_space<vmem>>, %arg6: memref<1x32xf32, #tpu.memory_space<vmem>>, %arg7: memref<32x64xf32, #tpu.memory_space<vmem>>, %arg8: memref<32x64xf32, #tpu.memory_space<vmem>>, %arg9: memref<1x64xf32, #tpu.memory_space<vmem>>, %arg10: memref<64x1xf32, #tpu.memory_space<vmem>>, %arg11: memref<1x1xf32, #tpu.memory_space<vmem>>, %arg12: memref<1x1x8xf32, #tpu.memory_space<vmem>>) attributes {dimension_semantics = [#tpu.dimension_semantics<parallel>], iteration_bounds = array<i64: 1>, scalar_prefetch = 0 : i64, scratch_operands = 0 : i64, tpu.core_type = #tpu.core_type<tc>, window_params = [{transform_indices = @transform_0, window_bounds = array<i64: 144, 6>}, {transform_indices = @transform_1, window_bounds = array<i64: 80, 4>}, {pipeline_mode = #tpu.pipeline_mode<synchronous>, transform_indices = @transform_2, window_bounds = array<i64: 3, 6, 32>}, {pipeline_mode = #tpu.pipeline_mode<synchronous>, transform_indices = @transform_3, window_bounds = array<i64: 1, 32>}, {pipeline_mode = #tpu.pipeline_mode<synchronous>, transform_indices = @transform_4, window_bounds = array<i64: 3, 4, 32>}, {pipeline_mode = #tpu.pipeline_mode<synchronous>, transform_indices = @transform_5, window_bounds = array<i64: 1, 32>}, {pipeline_mode = #tpu.pipeline_mode<synchronous>, transform_indices = @transform_6, window_bounds = array<i64: 32, 64>}, {pipeline_mode = #tpu.pipeline_mode<synchronous>, transform_indices = @transform_7, window_bounds = array<i64: 32, 64>}, {pipeline_mode = #tpu.pipeline_mode<synchronous>, transform_indices = @transform_8, window_bounds = array<i64: 1, 64>}, {pipeline_mode = #tpu.pipeline_mode<synchronous>, transform_indices = @transform_9, window_bounds = array<i64: 64, 1>}, {pipeline_mode = #tpu.pipeline_mode<synchronous>, transform_indices = @transform_10, window_bounds = array<i64: 1, 1>}, {transform_indices = @transform_11, window_bounds = array<i64: 1, 1, 8>}]} {
    %c0 = arith.constant 0 : index
    %c0_0 = arith.constant 0 : index
    %0 = vector.load %arg1[%c0, %c0_0] : memref<144x6xf32, #tpu.memory_space<vmem>>, vector<144x6xf32>
    %c0_1 = arith.constant 0 : index
    %c0_2 = arith.constant 0 : index
    %c0_3 = arith.constant 0 : index
    %1 = vector.load %arg3[%c0_1, %c0_2, %c0_3] : memref<3x6x32xf32, #tpu.memory_space<vmem>>, vector<1x6x32xf32>
    %2 = vector.shape_cast %1 : vector<1x6x32xf32> to vector<6x32xf32>
    %cst = arith.constant dense<0.000000e+00> : vector<144x32xf32>
    %3 = tpu.matmul %0, %2, %cst {dimension_numbers = #tpu.dot_dimension_numbers<[1], [0], [0], [1], [0, 0, 1, 1], [], []>} : vector<144x6xf32>, vector<6x32xf32>, vector<144x32xf32> -> vector<144x32xf32>
    %4 = vector.shape_cast %3 : vector<144x32xf32> to vector<8x18x32xf32>
    %c1 = arith.constant 1 : index
    %c0_4 = arith.constant 0 : index
    %c0_5 = arith.constant 0 : index
    %5 = vector.load %arg3[%c1, %c0_4, %c0_5] : memref<3x6x32xf32, #tpu.memory_space<vmem>>, vector<1x6x32xf32>
    %6 = vector.shape_cast %5 : vector<1x6x32xf32> to vector<6x32xf32>
    %cst_6 = arith.constant dense<0.000000e+00> : vector<144x32xf32>
    %7 = tpu.matmul %0, %6, %cst_6 {dimension_numbers = #tpu.dot_dimension_numbers<[1], [0], [0], [1], [0, 0, 1, 1], [], []>} : vector<144x6xf32>, vector<6x32xf32>, vector<144x32xf32> -> vector<144x32xf32>
    %8 = vector.shape_cast %7 : vector<144x32xf32> to vector<8x18x32xf32>
    %c2 = arith.constant 2 : index
    %c0_7 = arith.constant 0 : index
    %c0_8 = arith.constant 0 : index
    %9 = vector.load %arg3[%c2, %c0_7, %c0_8] : memref<3x6x32xf32, #tpu.memory_space<vmem>>, vector<1x6x32xf32>
    %10 = vector.shape_cast %9 : vector<1x6x32xf32> to vector<6x32xf32>
    %cst_9 = arith.constant dense<0.000000e+00> : vector<144x32xf32>
    %11 = tpu.matmul %0, %10, %cst_9 {dimension_numbers = #tpu.dot_dimension_numbers<[1], [0], [0], [1], [0, 0, 1, 1], [], []>} : vector<144x6xf32>, vector<6x32xf32>, vector<144x32xf32> -> vector<144x32xf32>
    %12 = vector.shape_cast %11 : vector<144x32xf32> to vector<8x18x32xf32>
    %13 = vector.extract_strided_slice %4 {offsets = [0, 0, 0], sizes = [8, 16, 32], strides = [1, 1, 1]} : vector<8x18x32xf32> to vector<8x16x32xf32>
    %14 = vector.extract_strided_slice %8 {offsets = [0, 1, 0], sizes = [8, 16, 32], strides = [1, 1, 1]} : vector<8x18x32xf32> to vector<8x16x32xf32>
    %15 = arith.addf %13, %14 : vector<8x16x32xf32>
    %16 = vector.extract_strided_slice %12 {offsets = [0, 2, 0], sizes = [8, 16, 32], strides = [1, 1, 1]} : vector<8x18x32xf32> to vector<8x16x32xf32>
    %17 = arith.addf %15, %16 : vector<8x16x32xf32>
    %cst_10 = arith.constant dense<0xFF800000> : vector<8x32xf32>
    %18 = vector.multi_reduction <maximumf>, %17, %cst_10 [1] : vector<8x16x32xf32> to vector<8x32xf32>
    %c0_11 = arith.constant 0 : index
    %c0_12 = arith.constant 0 : index
    %19 = vector.load %arg4[%c0_11, %c0_12] : memref<1x32xf32, #tpu.memory_space<vmem>>, vector<1x32xf32>
    %20 = vector.broadcast %19 : vector<1x32xf32> to vector<8x32xf32>
    %21 = arith.addf %18, %20 : vector<8x32xf32>
    %cst_13 = arith.constant 0.000000e+00 : f32
    %22 = vector.broadcast %cst_13 : f32 to vector<8x32xf32>
    %23 = arith.maximumf %21, %22 : vector<8x32xf32>
    %c0_14 = arith.constant 0 : index
    %c0_15 = arith.constant 0 : index
    %24 = vector.load %arg2[%c0_14, %c0_15] : memref<80x4xf32, #tpu.memory_space<vmem>>, vector<80x4xf32>
    %c0_16 = arith.constant 0 : index
    %c0_17 = arith.constant 0 : index
    %c0_18 = arith.constant 0 : index
    %25 = vector.load %arg5[%c0_16, %c0_17, %c0_18] : memref<3x4x32xf32, #tpu.memory_space<vmem>>, vector<1x4x32xf32>
    %26 = vector.shape_cast %25 : vector<1x4x32xf32> to vector<4x32xf32>
    %cst_19 = arith.constant dense<0.000000e+00> : vector<80x32xf32>
    %27 = tpu.matmul %24, %26, %cst_19 {dimension_numbers = #tpu.dot_dimension_numbers<[1], [0], [0], [1], [0, 0, 1, 1], [], []>} : vector<80x4xf32>, vector<4x32xf32>, vector<80x32xf32> -> vector<80x32xf32>
    %28 = vector.shape_cast %27 : vector<80x32xf32> to vector<8x10x32xf32>
    %c1_20 = arith.constant 1 : index
    %c0_21 = arith.constant 0 : index
    %c0_22 = arith.constant 0 : index
    %29 = vector.load %arg5[%c1_20, %c0_21, %c0_22] : memref<3x4x32xf32, #tpu.memory_space<vmem>>, vector<1x4x32xf32>
    %30 = vector.shape_cast %29 : vector<1x4x32xf32> to vector<4x32xf32>
    %cst_23 = arith.constant dense<0.000000e+00> : vector<80x32xf32>
    %31 = tpu.matmul %24, %30, %cst_23 {dimension_numbers = #tpu.dot_dimension_numbers<[1], [0], [0], [1], [0, 0, 1, 1], [], []>} : vector<80x4xf32>, vector<4x32xf32>, vector<80x32xf32> -> vector<80x32xf32>
    %32 = vector.shape_cast %31 : vector<80x32xf32> to vector<8x10x32xf32>
    %c2_24 = arith.constant 2 : index
    %c0_25 = arith.constant 0 : index
    %c0_26 = arith.constant 0 : index
    %33 = vector.load %arg5[%c2_24, %c0_25, %c0_26] : memref<3x4x32xf32, #tpu.memory_space<vmem>>, vector<1x4x32xf32>
    %34 = vector.shape_cast %33 : vector<1x4x32xf32> to vector<4x32xf32>
    %cst_27 = arith.constant dense<0.000000e+00> : vector<80x32xf32>
    %35 = tpu.matmul %24, %34, %cst_27 {dimension_numbers = #tpu.dot_dimension_numbers<[1], [0], [0], [1], [0, 0, 1, 1], [], []>} : vector<80x4xf32>, vector<4x32xf32>, vector<80x32xf32> -> vector<80x32xf32>
    %36 = vector.shape_cast %35 : vector<80x32xf32> to vector<8x10x32xf32>
    %37 = vector.extract_strided_slice %28 {offsets = [0, 0, 0], sizes = [8, 8, 32], strides = [1, 1, 1]} : vector<8x10x32xf32> to vector<8x8x32xf32>
    %38 = vector.extract_strided_slice %32 {offsets = [0, 1, 0], sizes = [8, 8, 32], strides = [1, 1, 1]} : vector<8x10x32xf32> to vector<8x8x32xf32>
    %39 = arith.addf %37, %38 : vector<8x8x32xf32>
    %40 = vector.extract_strided_slice %36 {offsets = [0, 2, 0], sizes = [8, 8, 32], strides = [1, 1, 1]} : vector<8x10x32xf32> to vector<8x8x32xf32>
    %41 = arith.addf %39, %40 : vector<8x8x32xf32>
    %cst_28 = arith.constant dense<0xFF800000> : vector<8x32xf32>
    %42 = vector.multi_reduction <maximumf>, %41, %cst_28 [1] : vector<8x8x32xf32> to vector<8x32xf32>
    %c0_29 = arith.constant 0 : index
    %c0_30 = arith.constant 0 : index
    %43 = vector.load %arg6[%c0_29, %c0_30] : memref<1x32xf32, #tpu.memory_space<vmem>>, vector<1x32xf32>
    %44 = vector.broadcast %43 : vector<1x32xf32> to vector<8x32xf32>
    %45 = arith.addf %42, %44 : vector<8x32xf32>
    %cst_31 = arith.constant 0.000000e+00 : f32
    %46 = vector.broadcast %cst_31 : f32 to vector<8x32xf32>
    %47 = arith.maximumf %45, %46 : vector<8x32xf32>
    %c0_32 = arith.constant 0 : index
    %c0_33 = arith.constant 0 : index
    %48 = vector.load %arg7[%c0_32, %c0_33] : memref<32x64xf32, #tpu.memory_space<vmem>>, vector<32x64xf32>
    %cst_34 = arith.constant dense<0.000000e+00> : vector<8x64xf32>
    %49 = tpu.matmul %23, %48, %cst_34 {dimension_numbers = #tpu.dot_dimension_numbers<[1], [0], [0], [1], [0, 0, 1, 1], [], []>} : vector<8x32xf32>, vector<32x64xf32>, vector<8x64xf32> -> vector<8x64xf32>
    %c0_35 = arith.constant 0 : index
    %c0_36 = arith.constant 0 : index
    %50 = vector.load %arg8[%c0_35, %c0_36] : memref<32x64xf32, #tpu.memory_space<vmem>>, vector<32x64xf32>
    %cst_37 = arith.constant dense<0.000000e+00> : vector<8x64xf32>
    %51 = tpu.matmul %47, %50, %cst_37 {dimension_numbers = #tpu.dot_dimension_numbers<[1], [0], [0], [1], [0, 0, 1, 1], [], []>} : vector<8x32xf32>, vector<32x64xf32>, vector<8x64xf32> -> vector<8x64xf32>
    %52 = arith.addf %49, %51 : vector<8x64xf32>
    %c0_38 = arith.constant 0 : index
    %c0_39 = arith.constant 0 : index
    %53 = vector.load %arg9[%c0_38, %c0_39] : memref<1x64xf32, #tpu.memory_space<vmem>>, vector<1x64xf32>
    %54 = vector.broadcast %53 : vector<1x64xf32> to vector<8x64xf32>
    %55 = arith.addf %52, %54 : vector<8x64xf32>
    %cst_40 = arith.constant 0.000000e+00 : f32
    %56 = vector.broadcast %cst_40 : f32 to vector<8x64xf32>
    %57 = arith.maximumf %55, %56 : vector<8x64xf32>
    %58 = tpu.transpose %57, [1, 0] : vector<8x64xf32> -> vector<64x8xf32>
    %c0_41 = arith.constant 0 : index
    %c0_42 = arith.constant 0 : index
    %59 = vector.load %arg10[%c0_41, %c0_42] : memref<64x1xf32, #tpu.memory_space<vmem>>, vector<64x1xf32>
    %60 = vector.broadcast %59 : vector<64x1xf32> to vector<64x8xf32>
    %61 = arith.mulf %58, %60 : vector<64x8xf32>
    %cst_43 = arith.constant dense<0.000000e+00> : vector<8xf32>
    %62 = vector.multi_reduction <add>, %61, %cst_43 [0] : vector<64x8xf32> to vector<8xf32>
    %63 = vector.shape_cast %62 : vector<8xf32> to vector<1x8xf32>
    %c0_44 = arith.constant 0 : index
    %c0_45 = arith.constant 0 : index
    %64 = vector.load %arg11[%c0_44, %c0_45] : memref<1x1xf32, #tpu.memory_space<vmem>>, vector<1x1xf32>
    %65 = vector.broadcast %64 : vector<1x1xf32> to vector<1x8xf32>
    %66 = arith.addf %63, %65 : vector<1x8xf32>
    %67 = vector.shape_cast %66 : vector<1x8xf32> to vector<1x1x8xf32>
    %c0_46 = arith.constant 0 : index
    %c0_47 = arith.constant 0 : index
    %c0_48 = arith.constant 0 : index
    %68 = vector.load %arg12[%c0_46, %c0_47, %c0_48] : memref<1x1x8xf32, #tpu.memory_space<vmem>>, vector<1x1x8xf32>
    tpu.vector_store %arg12[%c0_46, %c0_47, %c0_48], %67 {strides = array<i32>} : memref<1x1x8xf32, #tpu.memory_space<vmem>>, vector<1x1x8xf32>,
    return
  }
  func.func @transform_0(%arg0: i32) -> (i32, i32) {
    %c0_i32 = arith.constant 0 : i32
    %c0_i32_0 = arith.constant 0 : i32
    return %arg0, %c0_i32 : i32, i32
  }
  func.func @transform_1(%arg0: i32) -> (i32, i32) {
    %c0_i32 = arith.constant 0 : i32
    %c0_i32_0 = arith.constant 0 : i32
    return %arg0, %c0_i32 : i32, i32
  }
  func.func @transform_2(%arg0: i32) -> (i32, i32, i32) {
    %c0_i32 = arith.constant 0 : i32
    %c0_i32_0 = arith.constant 0 : i32
    %c0_i32_1 = arith.constant 0 : i32
    %c0_i32_2 = arith.constant 0 : i32
    return %c0_i32, %c0_i32_0, %c0_i32_1 : i32, i32, i32
  }
  func.func @transform_3(%arg0: i32) -> (i32, i32) {
    %c0_i32 = arith.constant 0 : i32
    %c0_i32_0 = arith.constant 0 : i32
    %c0_i32_1 = arith.constant 0 : i32
    return %c0_i32, %c0_i32_0 : i32, i32
  }
  func.func @transform_4(%arg0: i32) -> (i32, i32, i32) {
    %c0_i32 = arith.constant 0 : i32
    %c0_i32_0 = arith.constant 0 : i32
    %c0_i32_1 = arith.constant 0 : i32
    %c0_i32_2 = arith.constant 0 : i32
    return %c0_i32, %c0_i32_0, %c0_i32_1 : i32, i32, i32
  }
  func.func @transform_5(%arg0: i32) -> (i32, i32) {
    %c0_i32 = arith.constant 0 : i32
    %c0_i32_0 = arith.constant 0 : i32
    %c0_i32_1 = arith.constant 0 : i32
    return %c0_i32, %c0_i32_0 : i32, i32
  }
  func.func @transform_6(%arg0: i32) -> (i32, i32) {
    %c0_i32 = arith.constant 0 : i32
    %c0_i32_0 = arith.constant 0 : i32
    %c0_i32_1 = arith.constant 0 : i32
    return %c0_i32, %c0_i32_0 : i32, i32
  }
  func.func @transform_7(%arg0: i32) -> (i32, i32) {
    %c0_i32 = arith.constant 0 : i32
    %c0_i32_0 = arith.constant 0 : i32
    %c0_i32_1 = arith.constant 0 : i32
    return %c0_i32, %c0_i32_0 : i32, i32
  }
  func.func @transform_8(%arg0: i32) -> (i32, i32) {
    %c0_i32 = arith.constant 0 : i32
    %c0_i32_0 = arith.constant 0 : i32
    %c0_i32_1 = arith.constant 0 : i32
    return %c0_i32, %c0_i32_0 : i32, i32
  }
  func.func @transform_9(%arg0: i32) -> (i32, i32) {
    %c0_i32 = arith.constant 0 : i32
    %c0_i32_0 = arith.constant 0 : i32
    %c0_i32_1 = arith.constant 0 : i32
    return %c0_i32, %c0_i32_0 : i32, i32
  }
  func.func @transform_10(%arg0: i32) -> (i32, i32) {
    %c0_i32 = arith.constant 0 : i32
    %c0_i32_0 = arith.constant 0 : i32
    %c0_i32_1 = arith.constant 0 : i32
    return %c0_i32, %c0_i32_0 : i32, i32
  }
  func.func @transform_11(%arg0: i32) -> (i32, i32, i32) {
    %c0_i32 = arith.constant 0 : i32
    %c0_i32_0 = arith.constant 0 : i32
    %c0_i32_1 = arith.constant 0 : i32
    return %arg0, %c0_i32, %c0_i32_0 : i32, i32, i32
  }
}

</mosaic_0001>

<bundles_post_ra>
// kernel: tpu_custom_call.1
= control target key start
LH: loop header
LB: loop body
LE: loop exit
PB: predicated region body
PF: predicated region fallthrough
CT: control target
= control target key end

     0   :  { %s7021_s0 = inlined_call_operand.vmem [shape: f32[144,6], index: 0, kind: input, shape index: {}]   ;;  %s7022_s1 = inlined_call_operand.vmem [shape: f32[80,4], index: 1, kind: input, shape index: {}]   ;;  %s7023_s2 = inlined_call_operand.vmem [shape: f32[3,6,32], index: 2, kind: input, shape index: {}]   ;;  %s7024_s3 = inlined_call_operand.vmem [shape: f32[1,32], index: 3, kind: input, shape index: {}]   ;;  %s7025_s4 = inlined_call_operand.vmem [shape: f32[3,4,32], index: 4, kind: input, shape index: {}]   ;;  %s7026_s5 = inlined_call_operand.vmem [shape: f32[1,32], index: 5, kind: input, shape index: {}]   ;;  %s7027_s6 = inlined_call_operand.vmem [shape: f32[32,64], index: 6, kind: input, shape index: {}]   ;;  %s7028_s7 = inlined_call_operand.vmem [shape: f32[32,64], index: 7, kind: input, shape index: {}]   ;;  %s7029_s8 = inlined_call_operand.vmem [shape: f32[1,64], index: 8, kind: input, shape index: {}]   ;;  %s7030_s9 = inlined_call_operand.vmem [shape: f32[64,1], index: 9, kind: input, shape index: {}]   ;;  %s7031_s10 = inlined_call_operand.<no memory space> [shape: f32[1,1], index: 10, kind: input, shape index: {}]   ;;  %s7032_s11 = inlined_call_operand.hbm [shape: f32[1,1,8], index: 11, kind: output, shape index: {}]  }
   0x1   :  { %v16_v0 = vstv %s7031_s10 }
   0x2   :  { %17 = vst [vmem:[#allocation2] sm:$0x1] %v16_v0 }
   0x3   :  { %v59_v1 = vld [vmem:[%s7023_s2] sm:$0x3f]  ;;  %vm115_vm0 = vcmask 1045504   ;;  %v4350_v2 = vld [vmem:[%s7023_s2 + $0x8] sm:$0x3f]  ;;  %vm60_vm1 = vcmask 48128  }
   0x4   :  { %v4813_v3 = vld [vmem:[%s7021_s0] sm:$0xff]  ;;  %4546 = vmatprep.subr.msk.mxu0 %vm115_vm0, %v59_v1  ;;  %4575 = vmatprep.subr.msk.mxu1 %vm115_vm0, %v4350_v2  ;;  %v4820_v4 = vld [vmem:[%s7021_s0 + $0x8] sm:$0xff]  ;;  %v4370_v5 = vld [vmem:[%s7023_s2 + $0x10] sm:$0x3f]  ;;  %vm2575_vm2 = vcmask 1043456  }
   0x5   :  { %4547 = vmatpush3.msk.msra.mxu0 %vm115_vm0, %v59_v1  ;;  %4548 = vmatprep.mubr.msk.f32.mxu0 %vm60_vm1, %v4813_v3  ;;  %v4831_v6 = vld [vmem:[%s7021_s0 + $0x10] sm:$0xff]  ;;  %v2543_v7 = vld [vmem:[%s7025_s4] sm:$0xf]  ;;  %v4849_v8 = vld [vmem:[%s7021_s0 + $0x18] sm:$0xff] }
   0x6   :  { %4576 = vmatpush3.msk.msra.mxu1 %vm115_vm0, %v4350_v2  ;;  %4577 = vmatprep.mubr.msk.f32.mxu1 %vm60_vm1, %v4813_v3  ;;  %v4857_v9 = vld [vmem:[%s7021_s0 + $0x20] sm:$0xff]  ;;  %v4422_v10 = vld [vmem:[%s7025_s4 + $0x8] sm:$0xf]  ;;  %v4883_v13 = vld [vmem:[%s7021_s0 + $0x30] sm:$0xff] }
   0x7   :  { %4549 = vmatmul.mubr.msk.f32.vlgmr.msra.gmra.mxu0 %vm60_vm1, %v4820_v4  ;;  %4578 = vmatmul.mubr.msk.f32.vlgmr.msra.gmra.mxu1 %vm60_vm1, %v4820_v4  ;;  %v4874_v11 = vld [vmem:[%s7021_s0 + $0x28] sm:$0xff]  ;;  %v4410_v12 = vld [vmem:[%s7025_s4 + $0x4] sm:$0xf] }
   0x8   :  { %4604 = vmatprep.subr.msk.mxu0 %vm115_vm0, %v4370_v5  ;;  %4551 = vmatprep.mubr.msk.f32.mxu0 %vm60_vm1, %v4831_v6 }
   0x9   :  { %4605 = vmatpush3.msk.msra.mxu0 %vm115_vm0, %v4370_v5  ;;  %4580 = vmatprep.mubr.msk.f32.mxu1 %vm60_vm1, %v4831_v6 }
   0xa   :  { %4633 = vmatprep.subr.msk.mxu1 %vm2575_vm2, %v2543_v7  ;;  %4667 = vmatprep.subr.msk.mxu0 %vm2575_vm2, %v4422_v10 }
   0xb   :  { %4552 = vmatmul.mubr.msk.f32.gmra.mxu0 %vm60_vm1, %v4849_v8  ;;  %4581 = vmatmul.mubr.msk.f32.gmra.mxu1 %vm60_vm1, %v4849_v8 }
   0xc   :  { %4554 = vmatprep.mubr.msk.f32.mxu0 %vm60_vm1, %v4857_v9  ;;  %4583 = vmatprep.mubr.msk.f32.mxu1 %vm60_vm1, %v4857_v9 }
   0xd   :  { %4634 = vmatpush3.msk.msra.mxu1 %vm2575_vm2, %v2543_v7 }
   0xe   :  { %4650 = vmatprep.subr.msk.mxu1 %vm2575_vm2, %v4410_v12 }
   0xf   :  { %18 = vsyncpa [#allocation4], 0  ;;  %4555 = vmatmul.mubr.msk.f32.gmra.mxu0 %vm60_vm1, %v4874_v11  ;;  %4584 = vmatmul.mubr.msk.f32.gmra.mxu1 %vm60_vm1, %v4874_v11  ;;  %v48_v14 = vld [vmem:[%s7021_s0 + $0x38] sm:$0xff]  ;;  %v49_v15 = vld [vmem:[%s7021_s0 + $0x40] sm:$0xff]  ;;  %vm2544_vm3 = vcmask 31744   ;;  %v296_v37 = vlaneseq  ;;  %vm1686_vm4 = vcmask 1040384  }
  0x10   :  { %4557 = vmatprep.mubr.msk.f32.mxu0 %vm60_vm1, %v4883_v13  ;;  %4586 = vmatprep.mubr.msk.f32.mxu1 %vm60_vm1, %v4883_v13  ;;  %v50_v16 = vld [vmem:[%s7021_s0 + $0x48] sm:$0xff]  ;;  %v51_v17 = vld [vmem:[%s7021_s0 + $0x50] sm:$0xff]  ;;  %v52_v18 = vld [vmem:[%s7021_s0 + $0x58] sm:$0xff]  ;;  %v4736_v35 = vmov 1983009808   ;;  %vm1687_vm5 = vcmask 1042434  }
  0x11   :  { %v53_v19 = vld [vmem:[%s7021_s0 + $0x60] sm:$0xff]  ;;  %v54_v20 = vld [vmem:[%s7021_s0 + $0x68] sm:$0xff]  ;;  %v55_v21 = vld [vmem:[%s7021_s0 + $0x70] sm:$0xff]  ;;  %v294_v36 = vunpack.c.l.s4 %v4736_v35  ;;  %v5037_v39 = vshrl.u32 %v296_v37, 7  ;;  %vm1689_vm6 = vcmask 1044484   ;;  %vm1691_vm7 = vcmask 1046534  }
  0x12   :  { %v56_v22 = vld [vmem:[%s7021_s0 + $0x78] sm:$0xff]  ;;  %v57_v23 = vld [vmem:[%s7021_s0 + $0x80] sm:$0xff]  ;;  %v58_v24 = vld [vmem:[%s7021_s0 + $0x88] sm:$0xff]  ;;  %vm2437_vm11 = vcmask 261120   ;;  %vm4738_vm12 = vmmov 0   ;;  %vm4002_vm13 = vcmask 1041409  }
  0x13   :  { %4558 = vmatmul.mubr.msk.f32.gmra.mxu0 %vm60_vm1, %v48_v14  ;;  %4587 = vmatmul.mubr.msk.f32.gmra.mxu1 %vm60_vm1, %v48_v14  ;;  %v2533_v25 = vld [vmem:[%s7022_s1] sm:$0xff]  ;;  %v2534_v26 = vld [vmem:[%s7022_s1 + $0x8] sm:$0xff]  ;;  %v2535_v27 = vld [vmem:[%s7022_s1 + $0x10] sm:$0xff]  ;;  %v295_v38 = vunpack.c.0.s8 %v294_v36  ;;  %7178 = vst [vmem:[#allocation6_spill] sm:$0xff] %v5037_v39  ;;  %vm4007_vm14 = vcmask 1043459   ;;  %vm4012_vm15 = vcmask 1045509  }
  0x14   :  { %4560 = vmatprep.mubr.msk.f32.mxu0 %vm60_vm1, %v49_v15  ;;  %4589 = vmatprep.mubr.msk.f32.mxu1 %vm60_vm1, %v49_v15  ;;  %v2536_v28 = vld [vmem:[%s7022_s1 + $0x18] sm:$0xff]  ;;  %v2537_v29 = vld [vmem:[%s7022_s1 + $0x20] sm:$0xff]  ;;  %v2538_v30 = vld [vmem:[%s7022_s1 + $0x28] sm:$0xff]  ;;  %vm4017_vm0 = vcmask 1047559  }
  0x15   :  { %v2539_v31 = vld [vmem:[%s7022_s1 + $0x30] sm:$0xff]  ;;  %v2540_v32 = vld [vmem:[%s7022_s1 + $0x38] sm:$0xff]  ;;  %v2541_v33 = vld [vmem:[%s7022_s1 + $0x40] sm:$0xff]  ;;  %v5040_v40 = vsub.s32 %v295_v38, %v5037_v39 }
  0x16   :  { %v2542_v34 = vld [vmem:[%s7022_s1 + $0x48] sm:$0xff]  ;;  %vm5550_vm8 = vmor %vm1686_vm4, %vm1687_vm5 }
  0x17   :  { %4561 = vmatmul.mubr.msk.f32.gmra.mxu0 %vm60_vm1, %v50_v16  ;;  %4590 = vmatmul.mubr.msk.f32.gmra.mxu1 %vm60_vm1, %v50_v16  ;;  %vm1690_vm9 = vmor %vm5550_vm8, %vm1689_vm6 }
  0x18   :  { %4563 = vmatprep.mubr.msk.f32.mxu0 %vm60_vm1, %v51_v17  ;;  %4592 = vmatprep.mubr.msk.f32.mxu1 %vm60_vm1, %v51_v17  ;;  %vm5601_vm10 = vmor %vm1690_vm9, %vm1691_vm7 }
  0x1b   :  { %4564 = vmatmul.mubr.msk.f32.gmra.mxu0 %vm60_vm1, %v52_v18  ;;  %4593 = vmatmul.mubr.msk.f32.gmra.mxu1 %vm60_vm1, %v52_v18 }
  0x1c   :  { %4566 = vmatprep.mubr.msk.f32.mxu0 %vm60_vm1, %v53_v19  ;;  %4595 = vmatprep.mubr.msk.f32.mxu1 %vm60_vm1, %v53_v19 }
  0x1f   :  { %4567 = vmatmul.mubr.msk.f32.gmra.mxu0 %vm60_vm1, %v54_v20  ;;  %4596 = vmatmul.mubr.msk.f32.gmra.mxu1 %vm60_vm1, %v54_v20 }
  0x20   :  { %4569 = vmatprep.mubr.msk.f32.mxu0 %vm60_vm1, %v55_v21  ;;  %4598 = vmatprep.mubr.msk.f32.mxu1 %vm60_vm1, %v55_v21 }
  0x23   :  { %4570 = vmatmul.mubr.msk.f32.gmra.mxu0 %vm60_vm1, %v56_v22  ;;  %4599 = vmatmul.mubr.msk.f32.gmra.mxu1 %vm60_vm1, %v56_v22 }
  0x24   :  { %4572 = vmatprep.mubr.msk.f32.mxu0 %vm60_vm1, %v57_v23  ;;  %4601 = vmatprep.mubr.msk.f32.mxu1 %vm60_vm1, %v57_v23 }
  0x27   :  { %4573 = vmatmul.mubr.msk.f32.gmra.mxu0 %vm60_vm1, %v58_v24  ;;  %4602 = vmatmul.mubr.msk.f32.gmra.mxu1 %vm60_vm1, %v58_v24 }
  0x28   :  { %4606 = vmatprep.mubr.msk.f32.mxu0 %vm60_vm1, %v4813_v3  ;;  %4635 = vmatprep.mubr.msk.f32.mxu1 %vm2544_vm3, %v2533_v25 }
  0x2b   :  { %4607 = vmatmul.mubr.msk.f32.vlgmr.msra.gmra.mxu0 %vm60_vm1, %v4820_v4  ;;  %4636 = vmatmul.mubr.msk.f32.vlgmr.msra.gmra.mxu1 %vm2544_vm3, %v2534_v26 }
  0x2c   :  { %4668 = vmatpush3.msk.msra.mxu0 %vm2575_vm2, %v4422_v10  ;;  %4609 = vmatprep.mubr.msk.f32.mxu0 %vm60_vm1, %v4831_v6 }
  0x2d   :  { %4638 = vmatprep.mubr.msk.f32.mxu1 %vm2544_vm3, %v2535_v27  ;;  %4651 = vmatpush3.msk.msra.mxu1 %vm2575_vm2, %v4410_v12  ;;  %vm4315_vm2 = vcmask 57344  }
  0x2f   :  { %4610 = vmatmul.mubr.msk.f32.gmra.mxu0 %vm60_vm1, %v4849_v8  ;;  %4639 = vmatmul.mubr.msk.f32.gmra.mxu1 %vm2544_vm3, %v2536_v28 }
  0x30   :  { %4612 = vmatprep.mubr.msk.f32.mxu0 %vm60_vm1, %v4857_v9  ;;  %4641 = vmatprep.mubr.msk.f32.mxu1 %vm2544_vm3, %v2537_v29 }
  0x33   :  { %4613 = vmatmul.mubr.msk.f32.gmra.mxu0 %vm60_vm1, %v4874_v11  ;;  %4642 = vmatmul.mubr.msk.f32.gmra.mxu1 %vm2544_vm3, %v2538_v30 }
  0x34   :  { %4615 = vmatprep.mubr.msk.f32.mxu0 %vm60_vm1, %v4883_v13  ;;  %4644 = vmatprep.mubr.msk.f32.mxu1 %vm2544_vm3, %v2539_v31 }
  0x37   :  { %4616 = vmatmul.mubr.msk.f32.gmra.mxu0 %vm60_vm1, %v48_v14  ;;  %4645 = vmatmul.mubr.msk.f32.gmra.mxu1 %vm2544_vm3, %v2540_v32 }
  0x38   :  { %4618 = vmatprep.mubr.msk.f32.mxu0 %vm60_vm1, %v49_v15  ;;  %4647 = vmatprep.mubr.msk.f32.mxu1 %vm2544_vm3, %v2541_v33 }
  0x3b   :  { %4619 = vmatmul.mubr.msk.f32.gmra.mxu0 %vm60_vm1, %v50_v16  ;;  %4648 = vmatmul.mubr.msk.f32.gmra.mxu1 %vm2544_vm3, %v2542_v34 }
  0x3c   :  { %4621 = vmatprep.mubr.msk.f32.mxu0 %vm60_vm1, %v51_v17  ;;  %4652 = vmatprep.mubr.msk.f32.mxu1 %vm2544_vm3, %v2533_v25 }
  0x3f   :  { %4622 = vmatmul.mubr.msk.f32.gmra.mxu0 %vm60_vm1, %v52_v18  ;;  %4653 = vmatmul.mubr.msk.f32.vlgmr.msra.gmra.mxu1 %vm2544_vm3, %v2534_v26 }
  0x40   :  { %4624 = vmatprep.mubr.msk.f32.mxu0 %vm60_vm1, %v53_v19  ;;  %4655 = vmatprep.mubr.msk.f32.mxu1 %vm2544_vm3, %v2535_v27 }
  0x43   :  { %4625 = vmatmul.mubr.msk.f32.gmra.mxu0 %vm60_vm1, %v54_v20  ;;  %4656 = vmatmul.mubr.msk.f32.gmra.mxu1 %vm2544_vm3, %v2536_v28 }
  0x44   :  { %4627 = vmatprep.mubr.msk.f32.mxu0 %vm60_vm1, %v55_v21  ;;  %4658 = vmatprep.mubr.msk.f32.mxu1 %vm2544_vm3, %v2537_v29 }
  0x47   :  { %4628 = vmatmul.mubr.msk.f32.gmra.mxu0 %vm60_vm1, %v56_v22  ;;  %4659 = vmatmul.mubr.msk.f32.gmra.mxu1 %vm2544_vm3, %v2538_v30 }
  0x48   :  { %4630 = vmatprep.mubr.msk.f32.mxu0 %vm60_vm1, %v57_v23  ;;  %4661 = vmatprep.mubr.msk.f32.mxu1 %vm2544_vm3, %v2539_v31 }
  0x4b   :  { %4631 = vmatmul.mubr.msk.f32.gmra.mxu0 %vm60_vm1, %v58_v24  ;;  %4662 = vmatmul.mubr.msk.f32.gmra.mxu1 %vm2544_vm3, %v2540_v32  ;;  %vm4282_vm1 = vcmask 64512  }
  0x4c   :  { %4664 = vmatprep.mubr.msk.f32.mxu1 %vm2544_vm3, %v2541_v33  ;;  %4669 = vmatprep.mubr.msk.f32.mxu0 %vm2544_vm3, %v2533_v25 }
  0x4f   :  { %4665 = vmatmul.mubr.msk.f32.gmra.mxu1 %vm2544_vm3, %v2542_v34  ;;  %4670 = vmatmul.mubr.msk.f32.vlgmr.msra.gmra.mxu0 %vm2544_vm3, %v2534_v26 }
  0x50   :  { %4672 = vmatprep.mubr.msk.f32.mxu0 %vm2544_vm3, %v2535_v27 }
  0x53   :  { %4673 = vmatmul.mubr.msk.f32.gmra.mxu0 %vm2544_vm3, %v2536_v28 }
  0x54   :  { %4675 = vmatprep.mubr.msk.f32.mxu0 %vm2544_vm3, %v2537_v29 }
  0x57   :  { %4676 = vmatmul.mubr.msk.f32.gmra.mxu0 %vm2544_vm3, %v2538_v30 }
  0x58   :  { %4678 = vmatprep.mubr.msk.f32.mxu0 %vm2544_vm3, %v2539_v31 }
  0x5b   :  { %4679 = vmatmul.mubr.msk.f32.gmra.mxu0 %vm2544_vm3, %v2540_v32 }
  0x5c   :  { %4681 = vmatprep.mubr.msk.f32.mxu0 %vm2544_vm3, %v2541_v33 }
  0x5f   :  { %4682 = vmatmul.mubr.msk.f32.gmra.mxu0 %vm2544_vm3, %v2542_v34 }
  0xc7   :  { %v4550_v41 = vpop.f32.mrf.mxu0  ;;  %v4579_v42 = vpop.f32.mrf.mxu1 }
  0xc8   :  { %v309_v43 = vcombine.high %v4550_v41, %v4550_v41  ;;  %v853_v44 = vcombine.high %v4579_v42, %v4579_v42  ;;  %v5043_v45 = vrot.slane %v4579_v42, %v5040_v40  ;;  %v5051_v50 = vrot.slane %v4550_v41, %v5040_v40 }
  0xc9   :  { %v185_v46 = vpop.f32.mrf.mxu0  ;;  %v729_v47 = vpop.f32.mrf.mxu1 }
  0xca   :  { %v5046_v48 = vrot.slane %v853_v44, %v5040_v40  ;;  %v868_v49 = vcombine.high %v5043_v45, %v5043_v45  ;;  %v836_v51 = vcombine.high %v729_v47, %v729_v47  ;;  %v5054_v53 = vrot.slane %v309_v43, %v5040_v40 }
  0xcb   :  { %v4553_v52 = vpop.f32.mrf.mxu0  ;;  %v7040_v54 = vrot.slane %v5043_v45, 7  ;;  %v292_v55 = vcombine.high %v185_v46, %v185_v46  ;;  %v5060_v57 = vrot.slane %v185_v46, %v5040_v40  ;;  %v5063_v58 = vrot.slane %v729_v47, %v5040_v40  ;;  %v4582_v59 = vpop.f32.mrf.mxu1 }
  0xcc   :  { %v869_v56 = vcombine.high %v5046_v48, %v5046_v48  ;;  %v5065_v60 = vrot.slane %v868_v49, 7  ;;  %v7039_v61 = vrot.slane %v5046_v48, 7  ;;  %v5069_v62 = vrot.slane %v836_v51, %v5040_v40 }
  0xcd   :  { %v851_v0 = vcombine.high %v5063_v58, %v5063_v58  ;;  %v343_v1 = vcombine.high %v4553_v52, %v4553_v52  ;;  %v195_v2 = vpop.f32.mrf.mxu0  ;;  %v5079_v4 = vrot.slane %v7040_v54, 2  ;;  %v5082_v5 = vrot.slane %v292_v55, %v5040_v40  ;;  %v739_v11 = vpop.f32.mrf.mxu1 }
  0xce   :  { %v852_v6 = vcombine.high %v5069_v62, %v5069_v62  ;;  %v5086_v7 = vrot.slane %v869_v56, 7  ;;  %v887_v9 = vcombine.high %v4582_v59, %v4582_v59  ;;  %v5091_v10 = vrot.slane %v4582_v59, %v5040_v40 }
  0xcf   :  { %v5096_v13 = vrot.slane %v7039_v61, 2  ;;  %v7036_v14 = vrot.slane %v5069_v62, 7  ;;  %v326_v15 = vcombine.high %v195_v2, %v195_v2  ;;  %v5099_v16 = vrot.slane %v851_v0, 7  ;;  %v4556_v24 = vpop.f32.mrf.mxu0  ;;  %v4585_v29 = vpop.f32.mrf.mxu1 }
  0xd0   :  { %v5102_v17 = vrot.slane %v4553_v52, %v5040_v40  ;;  %v5105_v18 = vrot.slane %v343_v1, %v5040_v40  ;;  %v5108_v19 = vrot.slane %v887_v9, %v5040_v40  ;;  %v5113_v22 = vrot.slane %v852_v6, 7 }
  0xd1   :  { %v902_v23 = vcombine.high %v5091_v10, %v5091_v10  ;;  %v7034_v27 = vrot.slane %v5091_v10, 7  ;;  %v870_v28 = vcombine.high %v739_v11, %v739_v11  ;;  %v5123_v30 = vrot.slane %v7036_v14, 2  ;;  %v5146_v44 = vpop.f32.mrf.mxu0  ;;  %v749_v52 = vpop.f32.mrf.mxu1 }
  0xd2   :  { %v903_v26 = vcombine.high %v5108_v19, %v5108_v19  ;;  %v5126_v31 = vrot.slane %v195_v2, %v5040_v40  ;;  %v5129_v32 = vrot.slane %v326_v15, %v5040_v40  ;;  %v5132_v33 = vrot.slane %v739_v11, %v5040_v40  ;;  %7179 = vst [vmem:[#allocation7_spill] sm:$0xff] %v5146_v44 }
  0xd3   :  { %v5140_v37 = vrot.slane %v870_v28, %v5040_v40  ;;  %v5143_v41 = vrot.slane %v902_v23, 7  ;;  %v7033_v42 = vrot.slane %v5108_v19, 7  ;;  %v376_v43 = vcombine.high %v4556_v24, %v4556_v24  ;;  %v4588_v55 = vpop.f32.mrf.mxu1 }
  0xd4   :  { %v5150_v46 = vrot.slane %v7034_v27, 2  ;;  %v5152_v47 = vrot.slane %v903_v26, 7  ;;  %v921_v51 = vcombine.high %v4585_v29, %v4585_v29  ;;  %v885_v59 = vcombine.high %v5132_v33, %v5132_v33 }
  0xd5   :  { %v886_v49 = vcombine.high %v5140_v37, %v5140_v37  ;;  %v5163_v0 = vrot.slane %v4585_v29, %v5040_v40  ;;  %v7035_v1 = vrot.slane %v5140_v37, 7  ;;  %v5167_v2 = vrot.slane %v4556_v24, %v5040_v40  ;;  %v4559_v24 = vpop.f32.mrf.mxu0 }
  0xd6   :  { %v5170_v6 = vrot.slane %v921_v51, %v5040_v40  ;;  %v360_v9 = vcombine.high %v5146_v44, %v5146_v44  ;;  %v5177_v15 = vrot.slane %v7033_v42, 2  ;;  %v5180_v23 = vrot.slane %v376_v43, %v5040_v40 }
  0xd7   :  { %v936_v26 = vcombine.high %v5163_v0, %v5163_v0  ;;  %v5186_v51 = vrot.slane %v886_v49, 7  ;;  %v7037_v3 = vrot.slane %v5163_v0, 7  ;;  %v904_v35 = vcombine.high %v749_v52, %v749_v52  ;;  %v215_v27 = vpop.f32.mrf.mxu0 }
  0xd8   :  { %7180 = vst [vmem:[#allocation8_spill] sm:$0xff] %v5180_v23  ;;  %v937_v36 = vcombine.high %v5170_v6, %v5170_v6  ;;  %v7038_v25 = vrot.slane %v5170_v6, 7  ;;  %v5193_v43 = vrot.slane %v360_v9, %v5040_v40  ;;  %v5195_v56 = vrot.slane %v885_v59, 9 }
  0xd9   :  { %v5199_v28 = vrot.slane %v7035_v1, 2  ;;  %v5204_v29 = vrot.slane %v749_v52, %v5040_v40  ;;  %v5208_v42 = vrot.slane %v936_v26, 7  ;;  %v5213_v59 = vrot.slane %v904_v35, %v5040_v40  ;;  %v759_v52 = vpop.f32.mrf.mxu1  ;;  %v4562_v20 = vpop.f32.mrf.mxu0 }
  0xda   :  { %v5210_v9 = vrot.slane %v937_v36, 7  ;;  %v410_v49 = vcombine.high %v4559_v24, %v4559_v24  ;;  %v955_v34 = vcombine.high %v4588_v55, %v4588_v55  ;;  %v5220_v14 = vrot.slane %v7037_v3, 2 }
  0xdb   :  { %7181 = vst [vmem:[#allocation9_spill] sm:$0xff] %v5204_v29  ;;  %7183 = vst [vmem:[#allocation11_spill] sm:$0xff] %v5213_v59  ;;  %v5224_v36 = vrot.slane %v7038_v25, 2  ;;  %v920_v26 = vcombine.high %v5213_v59, %v5213_v59  ;;  %v919_v11 = vcombine.high %v5204_v29, %v5204_v29  ;;  %v7046_v8 = vrot.slane %v5204_v29, 7 }
  0xdc   :  { %7182 = vst [vmem:[#allocation10_spill] sm:$0xff] %v5210_v9  ;;  %v5234_v1 = vrot.slane %v4588_v55, %v5040_v40  ;;  %v5237_v3 = vrot.slane %v955_v34, %v5040_v40  ;;  %v393_v63 = vcombine.high %v215_v27, %v215_v27  ;;  %v938_v35 = vcombine.high %v759_v52, %v759_v52  ;;  %v225_v9 = vpop.f32.mrf.mxu0 }
  0xdd   :  { %7184 = vst [vmem:[#allocation12_spill] sm:$0xff] %v5224_v36  ;;  %v5242_v12 = vrot.slane %v4559_v24, %v5040_v40  ;;  %v5245_v61 = vrot.slane %v410_v49, %v5040_v40  ;;  %v5251_v38 = vrot.slane %v920_v26, 7  ;;  %v5255_v21 = vrot.slane %v215_v27, %v5040_v40  ;;  %v4591_v24 = vpop.f32.mrf.mxu1 }
  0xde   :  { %7185 = vst [vmem:[#allocation13_spill] sm:$0xff] %v5234_v1  ;;  %7186 = vst [vmem:[#allocation14_spill] sm:$0xff] %v5237_v3  ;;  %v970_v55 = vcombine.high %v5234_v1, %v5234_v1  ;;  %v971_v34 = vcombine.high %v5237_v3, %v5237_v3  ;;  %v5258_v54 = vrot.slane %v759_v52, %v5040_v40  ;;  %v5262_v49 = vrot.slane %v7046_v8, 2 }
  0xdf   :  { %7187 = vst [vmem:[#allocation15_spill] sm:$0xff] %v5242_v12  ;;  %7188 = vst [vmem:[#allocation16_spill] sm:$0xff] %v5245_v61  ;;  %v5264_v39 = vrot.slane %v919_v11, 7  ;;  %v5268_v26 = vrot.slane %v393_v63, %v5040_v40  ;;  %v5276_v52 = vrot.slane %v938_v35, %v5040_v40  ;;  %v443_v23 = vcombine.high %v4562_v20, %v4562_v20  ;;  %v769_v59 = vpop.f32.mrf.mxu1 }
  0xe0   :  { %7189 = vst [vmem:[#allocation17_spill] sm:$0xff] %v5255_v21  ;;  %7190 = vst [vmem:[#allocation18_spill] sm:$0xff] %v5258_v54  ;;  %v5271_v36 = vrot.slane %v970_v55, 7  ;;  %v5273_v27 = vrot.slane %v971_v34, 7  ;;  %v953_v63 = vcombine.high %v5258_v54, %v5258_v54  ;;  %v7197_v55 = vrot.slane %v5234_v1, 7  ;;  %v4565_v21 = vpop.f32.mrf.mxu0 }
  0xe1   :  { %7191 = vst [vmem:[#allocation19_spill] sm:$0xff] %v5262_v49  ;;  %7192 = vst [vmem:[#allocation20_spill] sm:$0xff] %v5264_v39  ;;  %v7199_v8 = vrot.slane %v5237_v3, 7  ;;  %v989_v61 = vcombine.high %v4591_v24, %v4591_v24  ;;  %v5299_v25 = vrot.slane %v4591_v24, %v5040_v40  ;;  %v954_v35 = vcombine.high %v5276_v52, %v5276_v52 }
  0xe2   :  { %7193 = vst [vmem:[#allocation21_spill] sm:$0xff] %v5268_v26  ;;  %7194 = vst [vmem:[#allocation22_spill] sm:$0xff] %v5271_v36  ;;  %v5287_v34 = vrot.slane %v7197_v55, 2  ;;  %v5306_v44 = vrot.slane %v4562_v20, %v5040_v40  ;;  %v427_v26 = vcombine.high %v225_v9, %v225_v9  ;;  %v5323_v20 = vrot.slane %v769_v59, %v5040_v40 }
  0xe3   :  { %7195 = vst [vmem:[#allocation23_spill] sm:$0xff] %v5273_v27  ;;  %7196 = vst [vmem:[#allocation24_spill] sm:$0xff] %v5276_v52  ;;  %v5294_v12 = vrot.slane %v7199_v8, 2  ;;  %v5308_v8 = vrot.slane %v953_v63, 7  ;;  %v5314_v11 = vrot.slane %v989_v61, %v5040_v40  ;;  %v1004_v24 = vcombine.high %v5299_v25, %v5299_v25  ;;  %v4594_v63 = vpop.f32.mrf.mxu1 }
  0xe4   :  { %7198 = vst [vmem:[#allocation25_spill] sm:$0xff] %v5287_v34  ;;  %7201 = vst [vmem:[#allocation27_spill] sm:$0xff] %v5299_v25  ;;  %v7206_v34 = vrot.slane %v5258_v54, 7  ;;  %v972_v27 = vcombine.high %v769_v59, %v769_v59  ;;  %v5329_v61 = vrot.slane %v225_v9, %v5040_v40  ;;  %v477_v36 = vcombine.high %v4565_v21, %v4565_v21 }
  0xe5   :  { %7200 = vst [vmem:[#allocation26_spill] sm:$0xff] %v5294_v12  ;;  %7202 = vst [vmem:[#allocation28_spill] sm:$0xff] %v5306_v44  ;;  %v5311_v12 = vrot.slane %v443_v23, %v5040_v40  ;;  %v1005_v23 = vcombine.high %v5314_v11, %v5314_v11  ;;  %v987_v59 = vcombine.high %v5323_v20, %v5323_v20  ;;  %v5339_v3 = vrot.slane %v954_v35, 9  ;;  %v235_v44 = vpop.f32.mrf.mxu0  ;;  %v779_v39 = vpop.f32.mrf.mxu1 }
  0xe6   :  { %7203 = vst [vmem:[#allocation29_spill] sm:$0xff] %v5308_v8  ;;  %7205 = vst [vmem:[#allocation31_spill] sm:$0xff] %v5314_v11  ;;  %v5320_v55 = vrot.slane %v7206_v34, 2  ;;  %v5333_v34 = vrot.slane %v1004_v24, 7  ;;  %v5344_v9 = vrot.slane %v972_v27, %v5040_v40  ;;  %v5350_v24 = vrot.slane %v427_v26, %v5040_v40 }
  0xe7   :  { %7204 = vst [vmem:[#allocation30_spill] sm:$0xff] %v5311_v12  ;;  %7208 = vst [vmem:[#allocation33_spill] sm:$0xff] %v5323_v20  ;;  %v5347_v54 = vrot.slane %v1005_v23, 7  ;;  %v5356_v1 = vrot.slane %v4565_v21, %v5040_v40  ;;  %v5359_v27 = vrot.slane %v477_v36, %v5040_v40  ;;  %v1023_v52 = vcombine.high %v4594_v63, %v4594_v63 }
  0xe8   :  { %7207 = vst [vmem:[#allocation32_spill] sm:$0xff] %v5320_v55  ;;  %7209 = vst [vmem:[#allocation34_spill] sm:$0xff] %v5329_v61  ;;  %v7217_v49 = vrot.slane %v5314_v11, 7  ;;  %v5366_v12 = vrot.slane %v987_v59, 7  ;;  %v5369_v55 = vrot.slane %v4594_v63, %v5040_v40  ;;  %v1006_v36 = vcombine.high %v779_v39, %v779_v39  ;;  %v5385_v63 = vpop.f32.mrf.mxu0 }
  0xe9   :  { %7210 = vst [vmem:[#allocation35_spill] sm:$0xff] %v5333_v34  ;;  %7211 = vst [vmem:[#allocation36_spill] sm:$0xff] %v5339_v3  ;;  %v5373_v21 = vrot.slane %v1023_v52, %v5040_v40  ;;  %v988_v23 = vcombine.high %v5344_v9, %v5344_v9  ;;  %v5383_v59 = vrot.slane %v779_v39, %v5040_v40 }
  0xea   :  { %7212 = vst [vmem:[#allocation37_spill] sm:$0xff] %v5344_v9  ;;  %7213 = vst [vmem:[#allocation38_spill] sm:$0xff] %v5347_v54  ;;  %v5364_v26 = vrot.slane %v7217_v49, 2  ;;  %v7222_v49 = vrot.slane %v5323_v20, 7  ;;  %v5394_v54 = vrot.slane %v235_v44, %v5040_v40  ;;  %v4597_v20 = vpop.f32.mrf.mxu1  ;;  %v511_v11 = vcombine.high %v5385_v63, %v5385_v63  ;;  %v245_v8 = vpop.f32.mrf.mxu0 }
  0xeb   :  { %7214 = vst [vmem:[#allocation39_spill] sm:$0xff] %v5350_v24  ;;  %7215 = vst [vmem:[#allocation40_spill] sm:$0xff] %v5356_v1  ;;  %v460_v24 = vcombine.high %v235_v44, %v235_v44  ;;  %v1039_v61 = vcombine.high %v5373_v21, %v5373_v21  ;;  %v1021_v52 = vcombine.high %v5383_v59, %v5383_v59  ;;  %v5414_v25 = vrot.slane %v988_v23, 7 }
  0xec   :  { %7216 = vst [vmem:[#allocation41_spill] sm:$0xff] %v5359_v27  ;;  %7218 = vst [vmem:[#allocation42_spill] sm:$0xff] %v5364_v26  ;;  %v5380_v26 = vrot.slane %v7222_v49, 2  ;;  %v1038_v49 = vcombine.high %v5369_v55, %v5369_v55  ;;  %v7228_v27 = vrot.slane %v5344_v9, 7  ;;  %v789_v9 = vpop.f32.mrf.mxu1  ;;  %v7235_v23 = vrot.slane %v5373_v21, 7 }
  0xed   :  { %7219 = vst [vmem:[#allocation43_spill] sm:$0xff] %v5366_v12  ;;  %7220 = vst [vmem:[#allocation44_spill] sm:$0xff] %v5369_v55  ;;  %v5410_v44 = vrot.slane %v460_v24, %v5040_v40  ;;  %v5417_v39 = vrot.slane %v1039_v61, 7  ;;  %v5441_v34 = vrot.slane %v511_v11, %v5040_v40 }
  0xee   :  { %7221 = vst [vmem:[#allocation45_spill] sm:$0xff] %v5373_v21  ;;  %7223 = vst [vmem:[#allocation46_spill] sm:$0xff] %v5380_v26  ;;  %v5400_v26 = vrot.slane %v1006_v36, %v5040_v40  ;;  %v5407_v1 = vrot.slane %v7228_v27, 2  ;;  %v5422_v27 = vrot.slane %v1021_v52, 7  ;;  %v5425_v12 = vrot.slane %v1038_v49, 9 }
  0xef   :  { %7224 = vst [vmem:[#allocation47_spill] sm:$0xff] %v5383_v59  ;;  %7225 = vst [vmem:[#allocation48_spill] sm:$0xff] %v5385_v63  ;;  %v5434_v36 = vrot.slane %v4597_v20, %v5040_v40  ;;  %v5464_v63 = vrot.slane %v789_v9, %v5040_v40 }
  0xf0   :  { %7226 = vst [vmem:[#allocation49_spill] sm:$0xff] %v5394_v54  ;;  %7227 = vst [vmem:[#allocation50_spill] sm:$0xff] %v5400_v26  ;;  %v1022_v35 = vcombine.high %v5400_v26, %v5400_v26  ;;  %v1040_v54 = vcombine.high %v789_v9, %v789_v9 }
  0xf1   :  { %7229 = vst [vmem:[#allocation51_spill] sm:$0xff] %v5407_v1  ;;  %7230 = vst [vmem:[#allocation52_spill] sm:$0xff] %v5410_v44  ;;  %v1057_v1 = vcombine.high %v4597_v20, %v4597_v20  ;;  %v494_v20 = vcombine.high %v245_v8, %v245_v8  ;;  %v7242_v44 = vrot.slane %v5400_v26, 7  ;;  %v1055_v9 = vcombine.high %v5464_v63, %v5464_v63 }
  0xf2   :  { %7231 = vst [vmem:[#allocation53_spill] sm:$0xff] %v5414_v25  ;;  %7232 = vst [vmem:[#allocation54_spill] sm:$0xff] %v5417_v39  ;;  %v5429_v25 = vrot.slane %v7235_v23, 2  ;;  %v5456_v11 = vrot.slane %v1022_v35, 7  ;;  %v5467_v52 = vrot.slane %v1040_v54, %v5040_v40  ;;  %v7251_v39 = vrot.slane %v5434_v36, 7 }
  0xf3   :  { %7233 = vst [vmem:[#allocation55_spill] sm:$0xff] %v5422_v27  ;;  %7234 = vst [vmem:[#allocation56_spill] sm:$0xff] %v5425_v12  ;;  %v5444_v49 = vrot.slane %v1057_v1, %v5040_v40  ;;  %v4571_v12 = vpop.f32.mrf.mxu0  ;;  %v5454_v24 = vrot.slane %v7242_v44, 2  ;;  %v4600_v44 = vpop.f32.mrf.mxu1  ;;  %v5502_v29 = vrot.slane %v1055_v9, 7 }
  0xf4   :  { %7236 = vst [vmem:[#allocation57_spill] sm:$0xff] %v5429_v25  ;;  %7237 = vst [vmem:[#allocation58_spill] sm:$0xff] %v5434_v36  ;;  %v7240_v25 = vrot.slane %v5383_v59, 7  ;;  %v544_v26 = vcombine.high %v4571_v12, %v4571_v12  ;;  %v5477_v59 = vrot.slane %v494_v20, %v5040_v40  ;;  %v5482_v54 = vrot.slane %v4571_v12, %v5040_v40 }
  0xf5   :  { %7238 = vst [vmem:[#allocation59_spill] sm:$0xff] %v5441_v34  ;;  %7239 = vst [vmem:[#allocation60_spill] sm:$0xff] %v5444_v49  ;;  %v1073_v1 = vcombine.high %v5444_v49, %v5444_v49  ;;  %v1056_v35 = vcombine.high %v5467_v52, %v5467_v52  ;;  %v255_v34 = vpop.f32.mrf.mxu0  ;;  %v5494_v21 = vrot.slane %v7251_v39, 2  ;;  %v799_v3 = vpop.f32.mrf.mxu1 }
  0xf6   :  { %v5449_v61 = vrot.slane %v7240_v25, 2  ;;  %7243 = vst [vmem:[#allocation62_spill] sm:$0xff] %v5454_v24  ;;  %v1072_v25 = vcombine.high %v5434_v36, %v5434_v36  ;;  %7244 = vst [vmem:[#allocation63_spill] sm:$0xff] %v5464_v63  ;;  %v5472_v24 = vrot.slane %v245_v8, %v5040_v40  ;;  %v5499_v55 = vrot.slane %v544_v26, %v5040_v40 }
  0xf7   :  { %7245 = vst [vmem:[#allocation64_spill] sm:$0xff] %v5467_v52  ;;  %v5474_v27 = vrot.slane %v1073_v1, 7  ;;  %7248 = vst [vmem:[#allocation67_spill] sm:$0xff] %v5477_v59  ;;  %v5489_v1 = vrot.slane %v4600_v44, %v5040_v40  ;;  %v527_v23 = vcombine.high %v255_v34, %v255_v34  ;;  %v7257_v8 = vrot.slane %v5464_v63, 7 }
  0xf8   :  { %7241 = vst [vmem:[#allocation61_spill] sm:$0xff] %v5449_v61  ;;  %7246 = vst [vmem:[#allocation65_spill] sm:$0xff] %v5472_v24  ;;  %v1091_v61 = vcombine.high %v4600_v44, %v4600_v44  ;;  %v5496_v12 = vrot.slane %v1072_v25, 7  ;;  %v1074_v24 = vcombine.high %v799_v3, %v799_v3  ;;  %v5530_v63 = vrot.slane %v799_v3, %v5040_v40 }
  0xf9   :  { %7247 = vst [vmem:[#allocation66_spill] sm:$0xff] %v5474_v27  ;;  %7249 = vst [vmem:[#allocation68_spill] sm:$0xff] %v5482_v54  ;;  %v1106_v20 = vcombine.high %v5489_v1, %v5489_v1  ;;  %v5516_v9 = vrot.slane %v7257_v8, 2  ;;  %v4574_v27 = vpop.f32.mrf.mxu0  ;;  %v4603_v8 = vpop.f32.mrf.mxu1  ;;  %v5538_v39 = vrot.slane %v255_v34, %v5040_v40  ;;  %v5541_v54 = vrot.slane %v527_v23, %v5040_v40 }
  0xfa   :  { %7250 = vst [vmem:[#allocation69_spill] sm:$0xff] %v5489_v1  ;;  %7252 = vst [vmem:[#allocation70_spill] sm:$0xff] %v5494_v21  ;;  %v5505_v44 = vrot.slane %v1091_v61, %v5040_v40  ;;  %v7259_v61 = vrot.slane %v5467_v52, 7  ;;  %v5522_v21 = vrot.slane %v1056_v35, 7  ;;  %v5544_v25 = vrot.slane %v1074_v24, %v5040_v40 }
  0xfb   :  { %7253 = vst [vmem:[#allocation71_spill] sm:$0xff] %v5496_v12  ;;  %7254 = vst [vmem:[#allocation72_spill] sm:$0xff] %v5499_v55  ;;  %v1089_v3 = vcombine.high %v5530_v63, %v5530_v63  ;;  %v578_v26 = vcombine.high %v4574_v27, %v4574_v27  ;;  %v5556_v34 = vrot.slane %v4574_v27, %v5040_v40  ;;  %v265_v24 = vpop.f32.mrf.mxu0 }
  0xfc   :  { %7255 = vst [vmem:[#allocation73_spill] sm:$0xff] %v5502_v29  ;;  %7256 = vst [vmem:[#allocation74_spill] sm:$0xff] %v5505_v44  ;;  %v5520_v49 = vrot.slane %v7259_v61, 2  ;;  %v1107_v35 = vcombine.high %v5505_v44, %v5505_v44  ;;  %v5535_v61 = vrot.slane %v1106_v20, 7  ;;  %v1125_v23 = vcombine.high %v4603_v8, %v4603_v8 }
  0xfd   :  { %7258 = vst [vmem:[#allocation75_spill] sm:$0xff] %v5516_v9  ;;  %7261 = vst [vmem:[#allocation77_spill] sm:$0xff] %v5530_v63  ;;  %v5559_v55 = vrot.slane %v4603_v8, %v5040_v40  ;;  %v7269_v9 = vrot.slane %v5489_v1, 7  ;;  %v1090_v59 = vcombine.high %v5544_v25, %v5544_v25  ;;  %v5568_v12 = vrot.slane %v1089_v3, 7 }
  0xfe   :  { %7260 = vst [vmem:[#allocation76_spill] sm:$0xff] %v5520_v49  ;;  %7262 = vst [vmem:[#allocation78_spill] sm:$0xff] %v5538_v39  ;;  %v5575_v36 = vrot.slane %v1125_v23, %v5040_v40  ;;  %v809_v49 = vpop.f32.mrf.mxu1  ;;  %v5581_v1 = vrot.slane %v1107_v35, 9  ;;  %v7273_v20 = vrot.slane %v5530_v63, 7  ;;  %v5592_v23 = vrot.slane %v578_v26, %v5040_v40 }
  0xff   :  { %7263 = vst [vmem:[#allocation79_spill] sm:$0xff] %v5541_v54  ;;  %7264 = vst [vmem:[#allocation80_spill] sm:$0xff] %v5544_v25  ;;  %v5564_v29 = vrot.slane %v7269_v9, 2  ;;  %v1140_v27 = vcombine.high %v5559_v55, %v5559_v55  ;;  %v561_v39 = vcombine.high %v265_v24, %v265_v24  ;;  %v4608_v9 = vpop.f32.mrf.mxu0  ;;  %v1108_v54 = vcombine.high %v809_v49, %v809_v49 }
 0x100   :  { %7267 = vst [vmem:[#allocation81_spill] sm:$0xff] %v5556_v34  ;;  %7268 = vst [vmem:[#allocation82_spill] sm:$0xff] %v5559_v55  ;;  %v5589_v8 = vrot.slane %v7273_v20, 2  ;;  %v7279_v26 = vrot.slane %v5544_v25, 7  ;;  %v1141_v52 = vcombine.high %v5575_v36, %v5575_v36  ;;  %v1337_v34 = vcombine.high %v4608_v9, %v4608_v9 }
 0x101   :  { %7270 = vst [vmem:[#allocation83_spill] sm:$0xff] %v5564_v29  ;;  %7271 = vst [vmem:[#allocation84_spill] sm:$0xff] %v5568_v12  ;;  %v5617_v35 = vrot.slane %v1140_v27, 7  ;;  %v5620_v3 = vrot.slane %v1108_v54, %v5040_v40  ;;  %v7284_v25 = vrot.slane %v5043_v45, 7  ;;  %v1708_v54 = vsel %vm5601_vm10, %v5079_v4, %v5065_v60 }
 0x102   :  { %7272 = vst [vmem:[#allocation85_spill] sm:$0xff] %v5581_v1  ;;  %7274 = vst [vmem:[#allocation86_spill] sm:$0xff] %v5589_v8  ;;  %v5597_v1 = vrot.slane %v1090_v59, 7  ;;  %v5607_v20 = vrot.slane %v7279_v26, 2  ;;  %v5615_v59 = vrot.slane %v809_v49, %v5040_v40  ;;  %v1344_v8 = vrot.slane %v4608_v9, %v5040_v40 }
 0x103   :  { %7275 = vst [vmem:[#allocation87_spill] sm:$0xff] %v5592_v23  ;;  %v5612_v23 = vrot.slane %v265_v24, %v5040_v40  ;;  %7283 = vst [vmem:[#allocation92_spill] sm:$0xff] %v5620_v3  ;;  %v7285_v24 = vrot.slane %v5113_v22, 2  ;;  %v7286_v9 = vrot.slane %v5559_v55, 7  ;;  %v5646_v44 = vrot.slane %v1337_v34, %v5040_v40 }
 0x104   :  { %7276 = vst [vmem:[#allocation88_spill] sm:$0xff] %v5597_v1  ;;  %7280 = vst [vmem:[#allocation89_spill] sm:$0xff] %v5607_v20  ;;  %v5625_v20 = vrot.slane %v561_v39, %v5040_v40  ;;  %v1352_v12 = vcombine.high %v1344_v8, %v1344_v8  ;;  %v1123_v45 = vcombine.high %v5615_v59, %v5615_v59  ;;  %v5666_v29 = vrot.slane %v1141_v52, 7 }
 0x105   :  { %7281 = vst [vmem:[#allocation90_spill] sm:$0xff] %v5612_v23  ;;  %7282 = vst [vmem:[#allocation91_spill] sm:$0xff] %v5615_v59  ;;  %v1705_v49 = vsel %vm5601_vm10, %v7285_v24, %v7284_v25  ;;  %v5640_v26 = vrot.slane %v7286_v9, 2  ;;  %v7288_v25 = vrot.slane %v5046_v48, 7  ;;  %v7289_v24 = vrot.slane %v5065_v60, 2 }
 0x106   :  { %v7290_v9 = vcombine.high %v5082_v5, %v5082_v5  ;;  %v1961_v1 = vadd.f32 %v1708_v54, %v5051_v50  ;;  %v7291_v48 = vrot.slane %v5575_v36, 7  ;;  %v7293_v55 = vrot.slane %v5615_v59, 7 }
 0x107   :  { %7287 = vst [vmem:[#allocation93_spill] sm:$0xff] %v5640_v26  ;;  %v1711_v4 = vsel %vm5601_vm10, %v7289_v24, %v7288_v25  ;;  %v1213_v26 = vpop.f32.mrf.mxu0  ;;  %v7295_v25 = vrot.slane %v5063_v58, 9  ;;  %v1702_v58 = vsel %vm5601_vm10, %v5123_v30, %v5113_v22 }
 0x108   :  { %v1960_v27 = vadd.f32 %v1705_v49, %v7290_v9  ;;  %v5664_v60 = vrot.slane %v7291_v48, 2  ;;  %v7292_v49 = vcombine.high %v5051_v50, %v5051_v50  ;;  %v1124_v9 = vcombine.high %v5620_v3, %v5620_v3 }
 0x109   :  { %v5677_v39 = vrot.slane %v7293_v55, 2  ;;  %v2025_v54 = vadd.f32 %v1961_v1, %v1352_v12  ;;  %v1320_v34 = vcombine.high %v1213_v26, %v1213_v26  ;;  %v5679_v48 = vrot.slane %v1123_v45, 7  ;;  %v4637_v55 = vpop.f32.mrf.mxu1 }
 0x10a   :  { %v1962_v24 = vadd.f32 %v1711_v4, %v7292_v49  ;;  %v1327_v23 = vrot.slane %v1213_v26, %v5040_v40  ;;  %v1696_v50 = vsel %vm5601_vm10, %v7295_v25, %v5099_v16  ;;  %v7296_v4 = vrot.slane %v5620_v3, 7  ;;  %v4611_v25 = vpop.f32.mrf.mxu0 }
 0x10b   :  { %7294 = vst [vmem:[#allocation94_spill] sm:$0xff] %v5677_v39  ;;  %v1334_v1 = vrot.slane %v1320_v34, %v5040_v40  ;;  %v7298_v12 = vrot.slane %v5069_v62, 7  ;;  %v7299_v45 = vrot.slane %v5099_v16, 2  ;;  %v2721_v3 = vcombine.high %v4637_v55, %v4637_v55 }
 0x10c   :  { %v2026_v52 = vadd.f32 %v1962_v24, %v5646_v44  ;;  %v5690_v49 = vrot.slane %v7296_v4, 2  ;;  %v1335_v4 = vcombine.high %v1327_v23, %v1327_v23  ;;  %v5704_v39 = vrot.slane %v1124_v9, 7 }
 0x10d   :  { %v1699_v26 = vsel %vm5601_vm10, %v7299_v45, %v7298_v12  ;;  %v1336_v34 = vcombine.high %v1334_v1, %v1334_v1  ;;  %v7300_v62 = vcombine.high %v5060_v57, %v5060_v57  ;;  %v1959_v12 = vadd.f32 %v1702_v58, %v5082_v5 }
 0x10e   :  { %7297 = vst [vmem:[#allocation95_spill] sm:$0xff] %v5690_v49  ;;  %v2166_v24 = vcombine.low %v2025_v54, %v2026_v52  ;;  %v1957_v49 = vadd.f32 %v1696_v50, %v5060_v57  ;;  %v1353_v45 = vcombine.high %v5646_v44, %v5646_v44  ;;  %v2024_v59 = vadd.f32 %v1960_v27, %v1344_v8 }
 0x10f   :  { %v1958_v16 = vadd.f32 %v1699_v26, %v7300_v62  ;;  %v1370_v30 = vcombine.high %v4611_v25, %v4611_v25  ;;  %v5713_v54 = vrot.slane %v4637_v55, %v5040_v40  ;;  %v2023_v52 = vadd.f32 %v1959_v12, %v1336_v34  ;;  %v1223_v62 = vpop.f32.mrf.mxu0 }
 0x110   :  { %v2021_v22 = vadd.f32 %v1957_v49, %v1335_v4  ;;  %v1377_v9 = vrot.slane %v4611_v25, %v5040_v40  ;;  %v5717_v50 = vrot.slane %v2721_v3, %v5040_v40  ;;  %v7301_v5 = vrot.slane %v5091_v10, 7 }
 0x111   :  { %v2022_v23 = vadd.f32 %v1958_v16, %v1334_v1  ;;  %v1384_v57 = vrot.slane %v1370_v30, %v5040_v40  ;;  %v7302_v26 = vrot.slane %v5186_v51, 2  ;;  %v1730_v8 = vsel %vm5601_vm10, %v5150_v46, %v5143_v41 }
 0x112   :  { %v2150_v55 = vcombine.low %v2023_v52, %v2024_v59  ;;  %v1385_v3 = vcombine.high %v1377_v9, %v1377_v9  ;;  %v7303_v58 = vrot.slane %v5108_v19, 7  ;;  %v7304_v10 = vrot.slane %v5143_v41, 2 }
 0x113   :  { %v1727_v44 = vsel %vm5601_vm10, %v7302_v26, %v7301_v5  ;;  %v2149_v49 = vcombine.low %v2021_v22, %v2022_v23  ;;  %v1386_v1 = vcombine.high %v1384_v57, %v1384_v57  ;;  %v1736_v4 = vsel %vm5601_vm10, %v5177_v15, %v5152_v47  ;;  %v2645_v23 = vpop.f32.mrf.mxu1 }
 0x114   :  { %v1733_v25 = vsel %vm5601_vm10, %v7304_v10, %v7303_v58  ;;  %v7305_v46 = vcombine.high %v5129_v32, %v5129_v32  ;;  %v2164_v19 = vrot.slane %v2150_v55, %v5040_v40  ;;  %v1968_v41 = vadd.f32 %v1730_v8, %v5102_v17 }
 0x115   :  { %v5745_v59 = vrot.slane %v2149_v49, %v5040_v40  ;;  %v7306_v16 = vcombine.high %v5102_v17, %v5102_v17  ;;  %v1970_v52 = vadd.f32 %v1736_v4, %v5105_v18  ;;  %v1354_v8 = vcombine.high %v1223_v62, %v1223_v62  ;;  %v4640_v4 = vpop.f32.mrf.mxu1 }
 0x116   :  { %v1967_v34 = vadd.f32 %v1727_v44, %v7305_v46  ;;  %v2032_v44 = vadd.f32 %v1968_v41, %v1385_v3  ;;  %v5760_v49 = vrot.slane %v2166_v24, %v5040_v40  ;;  %v2704_v17 = vcombine.high %v2645_v23, %v2645_v23  ;;  %v4614_v41 = vpop.f32.mrf.mxu0 }
 0x117   :  { %v1969_v12 = vadd.f32 %v1733_v25, %v7306_v16  ;;  %v2165_v5 = vcombine.low %v5745_v59, %v2164_v19  ;;  %v2034_v58 = vadd.f32 %v1970_v52, %v1386_v1  ;;  %v5763_v10 = vrot.slane %v2645_v23, %v5040_v40 }
 0x118   :  { %v2031_v26 = vadd.f32 %v1967_v34, %v1377_v9  ;;  %v1368_v46 = vrot.slane %v1354_v8, %v5040_v40  ;;  %v1714_v9 = vsel %vm5601_vm10, %v5096_v13, %v5086_v7  ;;  %v1361_v24 = vrot.slane %v1223_v62, %v5040_v40 }
 0x119   :  { %v2033_v55 = vadd.f32 %v1969_v12, %v1384_v57  ;;  %v7307_v34 = vrot.slane %v5132_v33, 7  ;;  %v7308_v57 = vrot.slane %v5086_v7, 2  ;;  %v7309_v59 = vrot.slane %v5140_v37, 7 }
 0x11a   :  { %v2184_v25 = vcombine.low %v2031_v26, %v2032_v44  ;;  %v2754_v16 = vcombine.high %v4640_v4, %v4640_v4  ;;  %v1369_v13 = vcombine.high %v1368_v46, %v1368_v46  ;;  %v1724_v62 = vsel %vm5601_vm10, %v5199_v28, %v5186_v51  ;;  %v7389_v26 = vld [vmem:[#allocation34_spill] sm:$0xff] }
 0x11b   :  { %v2200_v3 = vcombine.low %v2033_v55, %v2034_v58  ;;  %v1717_v1 = vsel %vm5601_vm10, %v7308_v57, %v7307_v34  ;;  %v1721_v19 = vsel %vm5601_vm10, %v5195_v56, %v7309_v59  ;;  %v1963_v33 = vadd.f32 %v1714_v9, %v5054_v53  ;;  %v5819_v34 = vpop.f32.mrf.mxu1 }
 0x11c   :  { %v5788_v7 = vrot.slane %v2704_v17, %v5040_v40  ;;  %v7310_v37 = vcombine.high %v5054_v53, %v5054_v53  ;;  %v7311_v56 = vcombine.high %v5126_v31, %v5126_v31  ;;  %v1966_v52 = vadd.f32 %v1724_v62, %v5129_v32  ;;  %7315 = vst [vmem:[#allocation97_spill] sm:$0xff] %v5819_v34 }
 0x11d   :  { %v5800_v28 = vrot.slane %v4640_v4, %v5040_v40  ;;  %v2027_v51 = vadd.f32 %v1963_v33, %v1353_v45  ;;  %v1404_v44 = vcombine.high %v4614_v41, %v4614_v41  ;;  %v1411_v53 = vrot.slane %v4614_v41, %v5040_v40  ;;  %v7391_v41 = vld [vmem:[#allocation39_spill] sm:$0xff] }
 0x11e   :  { %v1964_v12 = vadd.f32 %v1717_v1, %v7310_v37  ;;  %v1965_v23 = vadd.f32 %v1721_v19, %v7311_v56  ;;  %v2030_v55 = vadd.f32 %v1966_v52, %v1369_v13  ;;  %v5804_v58 = vrot.slane %v2754_v16, %v5040_v40  ;;  %v1233_v19 = vpop.f32.mrf.mxu0 }
 0x11f   :  { %v5807_v31 = vrot.slane %v1404_v44, %v5040_v40  ;;  %v7313_v32 = vrot.slane %v5163_v0, 7  ;;  %v7314_v9 = vrot.slane %v5251_v38, 2  ;;  %v1752_v45 = vsel %vm5601_vm10, %v5220_v14, %v5208_v42 }
 0x120   :  { %v2028_v8 = vadd.f32 %v1964_v12, %v1361_v24  ;;  %v2029_v17 = vadd.f32 %v1965_v23, %v1368_v46  ;;  %7312 = vst [vmem:[#allocation96_spill] sm:$0xff] %v5804_v58  ;;  %v1419_v57 = vcombine.high %v1411_v53, %v1411_v53  ;;  %v7316_v1 = vrot.slane %v5170_v6, 7  ;;  %v7362_v23 = vld [vmem:[#allocation17_spill] sm:$0xff]  ;;  %v7463_v58 = vld [vmem:[#allocation88_spill] sm:$0xff] }
 0x121   :  { %v1749_v4 = vsel %vm5601_vm10, %v7314_v9, %v7313_v32  ;;  %v7317_v59 = vrot.slane %v5208_v42, 2  ;;  %v2738_v16 = vcombine.high %v5819_v34, %v5819_v34  ;;  %v7318_v14 = vcombine.high %v5193_v43, %v5193_v43  ;;  %v7321_v32 = vld [vmem:[#allocation9_spill] sm:$0xff] }
 0x122   :  { %v2167_v46 = vcombine.low %v2027_v51, %v2028_v8  ;;  %v2183_v24 = vcombine.low %v2029_v17, %v2030_v55  ;;  %v1975_v62 = vadd.f32 %v1752_v45, %v5167_v2  ;;  %v5836_v6 = vrot.slane %v2184_v25, %v5040_v40 }
 0x123   :  { %v1755_v0 = vsel %vm5601_vm10, %v7317_v59, %v7316_v1  ;;  %v1974_v13 = vadd.f32 %v1749_v4, %v7318_v14  ;;  %v7319_v37 = vcombine.high %v5167_v2, %v5167_v2  ;;  %v2438_v56 = vsel %vm2437_vm11, %v2165_v5, -inf  ;;  %v7325_v1 = vld [vmem:[#allocation19_spill] sm:$0xff] }
 0x124   :  { %v2181_v42 = vrot.slane %v2167_v46, %v5040_v40  ;;  %v5840_v33 = vrot.slane %v2183_v24, %v5040_v40  ;;  %v2039_v52 = vadd.f32 %v1975_v62, %v1419_v57  ;;  %v1387_v51 = vcombine.high %v1233_v19, %v1233_v19  ;;  %v7324_v57 = vld [vmem:[#allocation20_spill] sm:$0xff]  ;;  %v7326_v14 = vld [vmem:[#allocation11_spill] sm:$0xff] }
 0x125   :  { %v1976_v12 = vadd.f32 %v1755_v0, %v7319_v37  ;;  %v5855_v2 = vrot.slane %v2738_v16, %v5040_v40  ;;  %v1394_v5 = vrot.slane %v1233_v19, %v5040_v40  ;;  %v7322_v9 = vrot.slane %v7321_v32, 7  ;;  %v7329_v37 = vld [vmem:[#allocation7_spill] sm:$0xff] }
 0x126   :  { %v2182_v44 = vcombine.low %v5760_v49, %v2181_v42  ;;  %v2199_v8 = vcombine.low %v5840_v33, %v5836_v6  ;;  %v1401_v55 = vrot.slane %v1387_v51, %v5040_v40  ;;  %v7323_v4 = vrot.slane %v5152_v47, 2  ;;  %v4617_v6 = vpop.f32.mrf.mxu0 }
 0x127   :  { %v2040_v17 = vadd.f32 %v1976_v12, %v5807_v31  ;;  %7320 = vst [vmem:[#allocation98_spill] sm:$0xff] %v5855_v2  ;;  %v2208_v49 = vrot.slane %v2200_v3, %v5040_v40  ;;  %v1742_v59 = vsel %vm5601_vm10, %v7325_v1, %v7324_v57  ;;  %v1402_v19 = vcombine.high %v1394_v5, %v1394_v5 }
 0x128   :  { %v1739_v45 = vsel %vm5601_vm10, %v7323_v4, %v7322_v9  ;;  %v2439_v46 = vsel %vm2437_vm11, %v2182_v44, -inf  ;;  %v1403_v16 = vcombine.high %v1401_v55, %v1401_v55  ;;  %v7327_v62 = vrot.slane %v7326_v14, 9  ;;  %v4643_v55 = vpop.f32.mrf.mxu1 }
 0x129   :  { %v2218_v24 = vcombine.low %v2039_v52, %v2040_v17  ;;  %v2440_v0 = vmax.f32 %v2438_v56, %v2439_v46  ;;  %v7328_v42 = vcombine.high %v5105_v18, %v5105_v18  ;;  %v7330_v12 = vrot.slane %v7329_v37, %v5040_v40 }
 0x12a   :  { %v1746_v47 = vsel %vm5601_vm10, %v7327_v62, %v5251_v38  ;;  %v1420_v38 = vcombine.high %v5807_v31, %v5807_v31  ;;  %v2038_v17 = vadd.f32 %v1974_v13, %v1411_v53  ;;  %v1437_v18 = vcombine.high %v4617_v6, %v4617_v6  ;;  %v7331_v62 = vld [vmem:[#allocation13_spill] sm:$0xff] }
 0x12b   :  { %v1971_v33 = vadd.f32 %v1739_v45, %v7328_v42  ;;  %v1972_v56 = vadd.f32 %v1742_v59, %v7330_v12  ;;  %v1973_v52 = vadd.f32 %v1746_v47, %v5193_v43  ;;  %v2441_v51 = vrot.slane %v2440_v0, 4  ;;  %v7333_v42 = vld [vmem:[#allocation36_spill] sm:$0xff] }
 0x12c   :  { %v5890_v46 = vrot.slane %v2218_v24, %v5040_v40  ;;  %v2787_v57 = vcombine.high %v4643_v55, %v4643_v55  ;;  %v1444_v43 = vrot.slane %v4617_v6, %v5040_v40  ;;  %v1451_v14 = vrot.slane %v1437_v18, %v5040_v40  ;;  %v7341_v18 = vld [vmem:[#allocation21_spill] sm:$0xff] }
 0x12d   :  { %v2035_v32 = vadd.f32 %v1971_v33, %v1394_v5  ;;  %v2036_v9 = vadd.f32 %v1972_v56, %v1402_v19  ;;  %v2037_v4 = vadd.f32 %v1973_v52, %v1403_v16  ;;  %v2442_v45 = vmax.f32 %v2440_v0, %v2441_v51  ;;  %v7334_v19 = vld [vmem:[#allocation22_spill] sm:$0xff]  ;;  %v7335_v0 = vld [vmem:[#allocation25_spill] sm:$0xff]  ;;  %v7339_v51 = vld [vmem:[#allocation23_spill] sm:$0xff] }
 0x12e   :  { %v7332_v47 = vrot.slane %v7331_v62, 7  ;;  %v1452_v5 = vcombine.high %v1444_v43, %v1444_v43  ;;  %v1774_v24 = vsel %vm5601_vm10, %v7335_v0, %v7334_v19  ;;  %v7336_v16 = vld [vmem:[#allocation14_spill] sm:$0xff]  ;;  %v7338_v6 = vrot.slane %v7334_v19, 2 }
 0x12f   :  { %v2201_v1 = vcombine.low %v2035_v32, %v2036_v9  ;;  %v2217_v59 = vcombine.low %v2037_v4, %v2038_v17  ;;  %v2443_v13 = vrot.slane %v2442_v45, 2  ;;  %v7337_v33 = vrot.slane %v7336_v16, 7  ;;  %v7340_v17 = vld [vmem:[#allocation26_spill] sm:$0xff]  ;;  %v2665_v4 = vpop.f32.mrf.mxu1 }
 0x130   :  { %v1771_v53 = vsel %vm5601_vm10, %v7333_v42, %v7332_v47  ;;  %v1453_v52 = vcombine.high %v1451_v14, %v1451_v14  ;;  %v1780_v32 = vsel %vm5601_vm10, %v7340_v17, %v7339_v51  ;;  %v7342_v62 = vcombine.high %v7341_v18, %v7341_v18  ;;  %v7343_v42 = vld [vmem:[#allocation15_spill] sm:$0xff] }
 0x131   :  { %v1777_v37 = vsel %vm5601_vm10, %v7338_v6, %v7337_v33  ;;  %v2215_v12 = vrot.slane %v2201_v1, %v5040_v40  ;;  %v5911_v56 = vrot.slane %v2217_v59, %v5040_v40  ;;  %v2444_v9 = vmax.f32 %v2442_v45, %v2443_v13  ;;  %v7346_v6 = vld [vmem:[#allocation16_spill] sm:$0xff]  ;;  %v1243_v13 = vpop.f32.mrf.mxu0  ;;  %v5935_v25 = vpop.f32.mrf.mxu1 }
 0x132   :  { %v1981_v47 = vadd.f32 %v1771_v53, %v7342_v62  ;;  %v1982_v19 = vadd.f32 %v1774_v24, %v7343_v42  ;;  %v7344_v1 = vcombine.high %v7343_v42, %v7343_v42  ;;  %v5925_v59 = vrot.slane %v4643_v55, %v5040_v40  ;;  %7348 = vst [vmem:[#allocation19_spill] sm:$0xff] %v5935_v25 }
 0x133   :  { %v2216_v16 = vcombine.low %v2208_v49, %v2215_v12  ;;  %v2233_v33 = vcombine.low %v5911_v56, %v5890_v46  ;;  %v1984_v45 = vadd.f32 %v1780_v32, %v7346_v6  ;;  %v2445_v17 = vrot.slane %v2444_v9, 1 }
 0x134   :  { %v1983_v0 = vadd.f32 %v1777_v37, %v7344_v1  ;;  %7345 = vst [vmem:[#allocation9_spill] sm:$0xff] %v5925_v59  ;;  %v5931_v18 = vrot.slane %v2787_v57, %v5040_v40  ;;  %v2045_v53 = vadd.f32 %v1981_v47, %v1444_v43  ;;  %v2046_v24 = vadd.f32 %v1982_v19, %v1452_v5  ;;  %v7349_v43 = vld [vmem:[#allocation10_spill] sm:$0xff]  ;;  %v7350_v5 = vld [vmem:[#allocation12_spill] sm:$0xff] }
 0x135   :  { %v2447_v62 = vsel %vm2437_vm11, %v2199_v8, -inf  ;;  %v2448_v37 = vsel %vm2437_vm11, %v2216_v16, -inf  ;;  %v2048_v55 = vadd.f32 %v1984_v45, %v1453_v52  ;;  %v2771_v49 = vcombine.high %v2665_v4, %v2665_v4  ;;  %v7472_v59 = vld [vmem:[#allocation84_spill] sm:$0xff] }
 0x136   :  { %7347 = vst [vmem:[#allocation20_spill] sm:$0xff] %v5931_v18  ;;  %v2047_v42 = vadd.f32 %v1983_v0, %v1451_v14  ;;  %v2449_v1 = vmax.f32 %v2447_v62, %v2448_v37  ;;  %v2251_v12 = vcombine.low %v2045_v53, %v2046_v24  ;;  %v1421_v3 = vcombine.high %v1243_v13, %v1243_v13  ;;  %v5949_v0 = vld [vmem:[%s7024_s3] ss:$0 sm:$0xff]  ;;  %v7355_v62 = vld [vmem:[#allocation32_spill] sm:$0xff] }
 0x137   :  { %v2821_v30 = vcombine.high %v5935_v25, %v5935_v25  ;;  %v1428_v57 = vrot.slane %v1243_v13, %v5040_v40  ;;  %v1758_v8 = vsel %vm5601_vm10, %v7350_v5, %v7349_v43  ;;  %v2446_v47 = vmax.f32 %v2444_v9, %v2445_v17  ;;  %v7351_v13 = vld [vmem:[#allocation18_spill] sm:$0xff]  ;;  %v7354_v17 = vld [vmem:[#allocation29_spill] sm:$0xff] }
 0x138   :  { %v2252_v32 = vcombine.low %v2047_v42, %v2048_v55  ;;  %v2450_v14 = vrot.slane %v2449_v1, 4  ;;  %v2259_v52 = vrot.slane %v2251_v12, %v5040_v40  ;;  %v1435_v19 = vrot.slane %v1421_v3, %v5040_v40  ;;  %v7357_v55 = vld [vmem:[#allocation24_spill] sm:$0xff] }
 0x139   :  { %v1436_v45 = vcombine.high %v1428_v57, %v1428_v57  ;;  %v7352_v53 = vrot.slane %v7351_v13, 7  ;;  %v7353_v24 = vrot.slane %v7349_v43, 2  ;;  %v1764_v3 = vsel %vm5601_vm10, %v7355_v62, %v7354_v17  ;;  %v7360_v43 = vld [vmem:[#allocation8_spill] sm:$0xff] }
 0x13a   :  { %v2266_v16 = vrot.slane %v2252_v32, %v5040_v40  ;;  %v2451_v37 = vmax.f32 %v2449_v1, %v2450_v14  ;;  %v5963_v42 = vrot.slane %v2665_v4, %v5040_v40  ;;  %v7358_v12 = vrot.slane %v7357_v55, 7 }
 0x13b   :  { %v1761_v9 = vsel %vm5601_vm10, %v7353_v24, %v7352_v53  ;;  %v7359_v32 = vrot.slane %v7354_v17, 2  ;;  %v1977_v13 = vadd.f32 %v1758_v8, %v7360_v43  ;;  %v7361_v53 = vcombine.high %v7360_v43, %v7360_v43  ;;  %v7386_v17 = vld [vmem:[#allocation53_spill] sm:$0xff] }
 0x13c   :  { %7356 = vst [vmem:[#allocation11_spill] sm:$0xff] %v5963_v42  ;;  %v2267_v44 = vcombine.low %v2259_v52, %v2266_v16  ;;  %v1979_v62 = vadd.f32 %v1764_v3, %v7362_v23  ;;  %v7363_v4 = vcombine.high %v7362_v23, %v7362_v23  ;;  %v5980_v14 = vadd.f32 %v5949_v0, %v2446_v47  ;;  %v4620_v52 = vpop.f32.mrf.mxu0 }
 0x13d   :  { %v1767_v5 = vsel %vm5601_vm10, %v7359_v32, %v7358_v12  ;;  %v1978_v24 = vadd.f32 %v1761_v9, %v7361_v53  ;;  %v2452_v55 = vrot.slane %v2451_v37, 2  ;;  %v5985_v8 = vrot.slane %v2821_v30, %v5040_v40  ;;  %v2675_v30 = vpop.f32.mrf.mxu1 }
 0x13e   :  { %v1980_v1 = vadd.f32 %v1767_v5, %v7363_v4  ;;  %7364 = vst [vmem:[#allocation7_spill] sm:$0xff] %v5980_v14  ;;  %v2041_v16 = vadd.f32 %v1977_v13, %v1420_v38  ;;  %v2043_v3 = vadd.f32 %v1979_v62, %v1436_v45  ;;  %v5993_v32 = vrot.slane %v2771_v49, %v5040_v40  ;;  %v1253_v13 = vpop.f32.mrf.mxu0  ;;  %v7381_v5 = vld [vmem:[#allocation46_spill] sm:$0xff] }
 0x13f   :  { %7365 = vst [vmem:[#allocation13_spill] sm:$0xff] %v5985_v8  ;;  %v2042_v9 = vadd.f32 %v1978_v24, %v1428_v57  ;;  %v2453_v47 = vmax.f32 %v2451_v37, %v2452_v55  ;;  %v2804_v38 = vcombine.high %v2675_v30, %v2675_v30  ;;  %v1471_v45 = vcombine.high %v4620_v52, %v4620_v52 }
 0x140   :  { %v2044_v12 = vadd.f32 %v1980_v1, %v1435_v19  ;;  %7366 = vst [vmem:[#allocation36_spill] sm:$0xff] %v5993_v32  ;;  %v6000_v19 = vrot.slane %v2675_v30, %v5040_v40  ;;  %v1478_v37 = vrot.slane %v4620_v52, %v5040_v40  ;;  %v2456_v55 = vsel %vm2437_vm11, %v2233_v33, -inf }
 0x141   :  { %v2234_v53 = vcombine.low %v2041_v16, %v2042_v9  ;;  %v2454_v57 = vrot.slane %v2453_v47, 1  ;;  %v7368_v16 = vld [vmem:[#allocation35_spill] sm:$0xff]  ;;  %v6027_v46 = vrot.slane %v2804_v38, %v5040_v40  ;;  %v1454_v56 = vcombine.high %v1253_v13, %v1253_v13  ;;  %v4649_v38 = vpop.f32.mrf.mxu1 }
 0x142   :  { %v2235_v31 = vcombine.low %v2043_v3, %v2044_v12  ;;  %7367 = vst [vmem:[#allocation22_spill] sm:$0xff] %v6000_v19  ;;  %v7369_v9 = vld [vmem:[#allocation27_spill] sm:$0xff]  ;;  %v7373_v49 = vrot.slane %v7368_v16, 2  ;;  %v2854_v33 = vcombine.high %v4649_v38, %v4649_v38 }
 0x143   :  { %v2242_v62 = vrot.slane %v2234_v53, %v5040_v40  ;;  %v2455_v1 = vmax.f32 %v2453_v47, %v2454_v57  ;;  %v7370_v3 = vrot.slane %v7369_v9, 9  ;;  %v7371_v12 = vld [vmem:[#allocation31_spill] sm:$0xff]  ;;  %v6024_v47 = vsel %vm2437_vm11, %v2267_v44, -inf  ;;  %7374 = vst [vmem:[#allocation25_spill] sm:$0xff] %v6027_v46 }
 0x144   :  { %v2249_v4 = vrot.slane %v2235_v31, %v5040_v40  ;;  %v7372_v30 = vrot.slane %v7371_v12, 7  ;;  %v6032_v57 = vrot.slane %v1471_v45, %v5040_v40  ;;  %v1486_v9 = vcombine.high %v1478_v37, %v1478_v37  ;;  %v7377_v37 = vld [vmem:[#allocation33_spill] sm:$0xff] }
 0x145   :  { %v1796_v52 = vsel %vm5601_vm10, %v7370_v3, %v7368_v16  ;;  %v1461_v16 = vrot.slane %v1253_v13, %v5040_v40  ;;  %v7378_v43 = vrot.slane %v7377_v37, 7  ;;  %v7379_v13 = vrot.slane %v7339_v51, 2 }
 0x146   :  { %v1799_v53 = vsel %vm5601_vm10, %v7373_v49, %v7372_v30  ;;  %v2250_v31 = vcombine.low %v2242_v62, %v2249_v4  ;;  %v7375_v49 = vld [vmem:[#allocation28_spill] sm:$0xff]  ;;  %v1468_v4 = vrot.slane %v1454_v56, %v5040_v40  ;;  %v2518_v30 = vadd.f32 %v5949_v0, %v2455_v1 }
 0x147   :  { %v1989_v12 = vadd.f32 %v1796_v52, %v7375_v49  ;;  %v7376_v44 = vcombine.high %v7375_v49, %v7375_v49  ;;  %v1469_v45 = vcombine.high %v1461_v16, %v1461_v16  ;;  %v1783_v52 = vsel %vm5601_vm10, %v7379_v13, %v7378_v43  ;;  %v7382_v49 = vld [vmem:[#allocation37_spill] sm:$0xff]  ;;  %v7387_v43 = vld [vmem:[#allocation51_spill] sm:$0xff] }
 0x148   :  { %v2457_v3 = vsel %vm2437_vm11, %v2250_v31, -inf  ;;  %v1470_v23 = vcombine.high %v1468_v4, %v1468_v4  ;;  %v7380_v31 = vld [vmem:[#allocation43_spill] sm:$0xff]  ;;  %v7383_v56 = vrot.slane %v7382_v49, 7  ;;  %v6059_v51 = vrot.slane %v4649_v38, %v5040_v40 }
 0x149   :  { %v1990_v62 = vadd.f32 %v1799_v53, %v7376_v44  ;;  %v2458_v24 = vmax.f32 %v2456_v55, %v2457_v3  ;;  %v1786_v53 = vsel %vm5601_vm10, %v7381_v5, %v7380_v31  ;;  %v7384_v1 = vrot.slane %v7380_v31, 2  ;;  %v4623_v3 = vpop.f32.mrf.mxu0 }
 0x14a   :  { %v2053_v37 = vadd.f32 %v1989_v12, %v1486_v9  ;;  %7385 = vst [vmem:[#allocation14_spill] sm:$0xff] %v6059_v51  ;;  %v1792_v13 = vsel %vm5601_vm10, %v7387_v43, %v7386_v17  ;;  %v7388_v5 = vcombine.high %v7346_v6, %v7346_v6  ;;  %v1986_v31 = vadd.f32 %v1786_v53, %v7389_v26  ;;  %v2685_v12 = vpop.f32.mrf.mxu1  ;;  %v7422_v51 = vld [vmem:[#allocation49_spill] sm:$0xff] }
 0x14b   :  { %v1789_v55 = vsel %vm5601_vm10, %v7384_v1, %v7383_v56  ;;  %v2459_v44 = vrot.slane %v2458_v24, 4  ;;  %v7390_v56 = vcombine.high %v7389_v26, %v7389_v26  ;;  %v1988_v9 = vadd.f32 %v1792_v13, %v7391_v41 }
 0x14c   :  { %v1985_v49 = vadd.f32 %v1783_v52, %v7388_v5  ;;  %v2526_v38 = vmax.f32 %v2518_v30, 0.0  ;;  %v2054_v27 = vadd.f32 %v1990_v62, %v6032_v57  ;;  %v1505_v22 = vcombine.high %v4623_v3, %v4623_v3  ;;  %v7395_v5 = vld [vmem:[#allocation44_spill] sm:$0xff] }
 0x14d   :  { %v1987_v1 = vadd.f32 %v1789_v55, %v7390_v56  ;;  %v2460_v15 = vmax.f32 %v2458_v24, %v2459_v44  ;;  %v2050_v17 = vadd.f32 %v1986_v31, %v1469_v45  ;;  %v2052_v19 = vadd.f32 %v1988_v9, %v1470_v23  ;;  %v1263_v44 = vpop.f32.mrf.mxu0  ;;  %v7401_v31 = vld [vmem:[#allocation56_spill] sm:$0xff] }
 0x14e   :  { %v2049_v14 = vadd.f32 %v1985_v49, %v1461_v16  ;;  %v1487_v26 = vcombine.high %v6032_v57, %v6032_v57  ;;  %v2837_v53 = vcombine.high %v2685_v12, %v2685_v12  ;;  %v6079_v41 = vrot.slane %v2854_v33, %v5040_v40  ;;  %v4654_v16 = vpop.f32.mrf.mxu1 }
 0x14f   :  { %v2051_v43 = vadd.f32 %v1987_v1, %v1468_v4  ;;  %v2461_v6 = vrot.slane %v2460_v15, 2  ;;  %v6083_v45 = vrot.slane %v2526_v38, 7  ;;  %v2285_v4 = vcombine.low %v2053_v37, %v2054_v27  ;;  %v7402_v38 = vld [vmem:[#allocation54_spill] sm:$0xff] }
 0x150   :  { %7392 = vst [vmem:[#allocation23_spill] sm:$0xff] %v6079_v41  ;;  %v2268_v62 = vcombine.low %v2049_v14, %v2050_v17  ;;  %v1519_v55 = vrot.slane %v1505_v22, %v5040_v40  ;;  %v6089_v33 = vrot.slane %v2685_v12, %v5040_v40  ;;  %v7396_v49 = vrot.slane %v7395_v5, 7  ;;  %v7399_v22 = vld [vmem:[#allocation45_spill] sm:$0xff] }
 0x151   :  { %v2269_v30 = vcombine.low %v2051_v43, %v2052_v19  ;;  %7393 = vst [vmem:[#allocation26_spill] sm:$0xff] %v6083_v45  ;;  %v2462_v23 = vmax.f32 %v2460_v15, %v2461_v6  ;;  %v7397_v14 = vrot.slane %v5456_v11, 2  ;;  %v6098_v15 = vrot.slane %v2837_v53, %v5040_v40  ;;  %v7403_v17 = vld [vmem:[#allocation57_spill] sm:$0xff]  ;;  %v7416_v45 = vld [vmem:[#allocation50_spill] sm:$0xff] }
 0x152   :  { %v2276_v13 = vrot.slane %v2268_v62, %v5040_v40  ;;  %7394 = vst [vmem:[#allocation21_spill] sm:$0xff] %v6089_v33  ;;  %v1512_v27 = vrot.slane %v4623_v3, %v5040_v40  ;;  %v7400_v37 = vrot.slane %v7399_v22, 7  ;;  %v3049_v1 = vcombine.high %v4654_v16, %v4654_v16  ;;  %v7404_v3 = vld [vmem:[#allocation52_spill] sm:$0xff] }
 0x153   :  { %v2283_v57 = vrot.slane %v2269_v30, %v5040_v40  ;;  %v1817_v19 = vsel %vm5601_vm10, %v7397_v14, %v7396_v49  ;;  %7398 = vst [vmem:[#allocation15_spill] sm:$0xff] %v6098_v15  ;;  %v2463_v9 = vrot.slane %v2462_v23, 1  ;;  %v1824_v43 = vsel %vm5601_vm10, %v7403_v17, %v7402_v38  ;;  %v7409_v17 = vld [vmem:[#allocation38_spill] sm:$0xff] }
 0x154   :  { %v1821_v56 = vsel %vm5601_vm10, %v7401_v31, %v7400_v37  ;;  %v1488_v6 = vcombine.high %v1263_v44, %v1263_v44  ;;  %v6111_v53 = vrot.slane %v2285_v4, %v5040_v40  ;;  %v1520_v62 = vcombine.high %v1519_v55, %v1519_v55 }
 0x155   :  { %v2284_v12 = vcombine.low %v2276_v13, %v2283_v57  ;;  %v7405_v30 = vcombine.high %v7404_v3, %v7404_v3  ;;  %v6117_v49 = vrot.slane %v4654_v16, %v5040_v40  ;;  %v7406_v13 = vld [vmem:[#allocation40_spill] sm:$0xff]  ;;  %v6124_v37 = vrot.slane %v3049_v1, %v5040_v40  ;;  %v7410_v16 = vld [vmem:[#allocation42_spill] sm:$0xff] }
 0x156   :  { %v7407_v57 = vcombine.high %v7406_v13, %v7406_v13  ;;  %v1495_v4 = vrot.slane %v1263_v44, %v5040_v40  ;;  %v7417_v33 = vrot.slane %v7416_v45, 7  ;;  %v7423_v45 = vcombine.high %v7422_v51, %v7422_v51 }
 0x157   :  { %v1996_v5 = vadd.f32 %v1817_v19, %v7405_v30  ;;  %v2466_v14 = vsel %vm2437_vm11, %v2284_v12, -inf  ;;  %v7408_v19 = vld [vmem:[#allocation41_spill] sm:$0xff]  ;;  %v2464_v12 = vmax.f32 %v2462_v23, %v2463_v9  ;;  %v3064_v44 = vcombine.high %v6117_v49, %v6117_v49 }
 0x158   :  { %v1997_v22 = vadd.f32 %v1821_v56, %v7407_v57  ;;  %v2467_v31 = vmax.f32 %v6024_v47, %v2466_v14  ;;  %v1998_v30 = vadd.f32 %v1824_v43, %v7408_v19  ;;  %v1502_v56 = vrot.slane %v1488_v6, %v5040_v40  ;;  %v2973_v6 = vpop.f32.mrf.mxu1 }
 0x159   :  { %v2060_v24 = vadd.f32 %v1996_v5, %v1512_v27  ;;  %v3065_v14 = vcombine.high %v6124_v37, %v6124_v37  ;;  %v1503_v57 = vcombine.high %v1495_v4, %v1495_v4  ;;  %v1802_v23 = vsel %vm5601_vm10, %v7410_v16, %v7409_v17  ;;  %v7411_v27 = vld [vmem:[#allocation47_spill] sm:$0xff] }
 0x15a   :  { %v2061_v52 = vadd.f32 %v1997_v22, %v1519_v55  ;;  %v2468_v13 = vrot.slane %v2467_v31, 4  ;;  %v2062_v1 = vadd.f32 %v1998_v30, %v1520_v62  ;;  %v7412_v55 = vrot.slane %v7411_v27, 7  ;;  %v7414_v22 = vld [vmem:[#allocation55_spill] sm:$0xff]  ;;  %v7415_v30 = vld [vmem:[#allocation61_spill] sm:$0xff] }
 0x15b   :  { %v7413_v9 = vrot.slane %v7409_v17, 2  ;;  %v1504_v5 = vcombine.high %v1502_v56, %v1502_v56  ;;  %v1808_v47 = vsel %vm5601_vm10, %v7415_v30, %v7414_v22  ;;  %v7418_v41 = vrot.slane %v7414_v22, 2  ;;  %v7419_v17 = vld [vmem:[#allocation62_spill] sm:$0xff] }
 0x15c   :  { %v2469_v62 = vmax.f32 %v2467_v31, %v2468_v13  ;;  %v1814_v27 = vsel %vm5601_vm10, %v7419_v17, %v5456_v11  ;;  %v1993_v30 = vadd.f32 %v1808_v47, %v7422_v51  ;;  %v6173_v11 = vrot.slane %v2973_v6, %v5040_v40 }
 0x15d   :  { %v1805_v43 = vsel %vm5601_vm10, %v7413_v9, %v7412_v55  ;;  %v1811_v16 = vsel %vm5601_vm10, %v7418_v41, %v7417_v33  ;;  %v7420_v55 = vld [vmem:[#allocation30_spill] sm:$0xff]  ;;  %v1995_v41 = vadd.f32 %v1814_v27, %v7404_v3  ;;  %v3032_v33 = vcombine.high %v2973_v6, %v2973_v6 }
 0x15e   :  { %v1991_v31 = vadd.f32 %v1802_v23, %v7420_v55  ;;  %v7421_v13 = vcombine.high %v7420_v55, %v7420_v55  ;;  %v2470_v15 = vrot.slane %v2469_v62, 2  ;;  %v1994_v22 = vadd.f32 %v1811_v16, %v7423_v45  ;;  %v4626_v55 = vpop.f32.mrf.mxu0 }
 0x15f   :  { %v2057_v46 = vadd.f32 %v1993_v30, %v1503_v57  ;;  %v6176_v23 = vadd.f32 %v5949_v0, %v2464_v12  ;;  %v2059_v47 = vadd.f32 %v1995_v41, %v1504_v5  ;;  %v7153_v51 = vrot.slane %v6124_v37, 7 }
 0x160   :  { %v1992_v9 = vadd.f32 %v1805_v43, %v7421_v13  ;;  %v2055_v18 = vadd.f32 %v1991_v31, %v1487_v26  ;;  %v2319_v43 = vcombine.low %v2061_v52, %v2062_v1  ;;  %v2058_v17 = vadd.f32 %v1994_v22, %v1502_v56  ;;  %v7425_v31 = vld [vmem:[#allocation58_spill] sm:$0xff]  ;;  %v4657_v22 = vpop.f32.mrf.mxu1  ;;  %v1273_v41 = vpop.f32.mrf.mxu0 }
 0x161   :  { %7424 = vst [vmem:[#allocation16_spill] sm:$0xff] %v6176_v23  ;;  %v2471_v13 = vmax.f32 %v2469_v62, %v2470_v15  ;;  %v6179_v16 = vrot.slane %v3065_v14, 7  ;;  %v6181_v27 = vrot.slane %v3064_v44, 9  ;;  %v6184_v57 = vrot.slane %v3032_v33, %v5040_v40 }
 0x162   :  { %v2056_v8 = vadd.f32 %v1992_v9, %v1495_v4  ;;  %v2302_v26 = vcombine.low %v2057_v46, %v2058_v17  ;;  %v2303_v4 = vcombine.low %v2059_v47, %v2060_v24  ;;  %v3047_v52 = vcombine.high %v6173_v11, %v6173_v11  ;;  %v7428_v17 = vld [vmem:[#allocation71_spill] sm:$0xff]  ;;  %v7429_v47 = vld [vmem:[#allocation70_spill] sm:$0xff] }
 0x163   :  { %v1538_v12 = vcombine.high %v4626_v55, %v4626_v55  ;;  %v1545_v15 = vrot.slane %v4626_v55, %v5040_v40  ;;  %v6192_v1 = vrot.slane %v2319_v43, %v5040_v40  ;;  %v2472_v46 = vrot.slane %v2471_v13, 1 }
 0x164   :  { %v2286_v3 = vcombine.low %v2055_v18, %v2056_v8  ;;  %v2310_v18 = vrot.slane %v2302_v26, %v5040_v40  ;;  %v2317_v8 = vrot.slane %v2303_v4, %v5040_v40  ;;  %v6198_v24 = vrot.slane %v7153_v51, 2  ;;  %v7430_v4 = vld [vmem:[#allocation67_spill] sm:$0xff] }
 0x165   :  { %v3048_v62 = vcombine.high %v6184_v57, %v6184_v57  ;;  %v1553_v5 = vcombine.high %v1545_v15, %v1545_v15  ;;  %v7426_v9 = vrot.slane %v7425_v31, 7  ;;  %v7427_v30 = vrot.slane %v5522_v21, 2 }
 0x166   :  { %v2300_v0 = vrot.slane %v2286_v3, %v5040_v40  ;;  %v2318_v6 = vcombine.low %v2310_v18, %v2317_v8  ;;  %v6210_v33 = vrot.slane %v3047_v52, 7  ;;  %v7154_v43 = vrot.slane %v6184_v57, 7  ;;  %v7432_v8 = vld [vmem:[#allocation48_spill] sm:$0xff] }
 0x167   :  { %v1839_v45 = vsel %vm5601_vm10, %v7427_v30, %v7426_v9  ;;  %v1842_v55 = vsel %vm5601_vm10, %v7429_v47, %v7428_v17  ;;  %v7433_v52 = vrot.slane %v7432_v8, %v5040_v40  ;;  %v7434_v30 = vld [vmem:[#allocation66_spill] sm:$0xff]  ;;  %v6232_v17 = vrot.slane %v4657_v22, %v5040_v40 }
 0x168   :  { %v2301_v14 = vcombine.low %v6111_v53, %v2300_v0  ;;  %v1552_v53 = vrot.slane %v1538_v12, %v5040_v40  ;;  %v2475_v26 = vsel %vm2437_vm11, %v2318_v6, -inf  ;;  %v7431_v0 = vcombine.high %v7430_v4, %v7430_v4  ;;  %v7435_v12 = vld [vmem:[#allocation60_spill] sm:$0xff] }
 0x169   :  { %v2004_v31 = vadd.f32 %v1842_v55, %v7433_v52  ;;  %v7436_v56 = vrot.slane %v7435_v12, 9  ;;  %v3083_v51 = vcombine.high %v4657_v22, %v4657_v22  ;;  %v6236_v55 = vrot.slane %v3048_v62, 7  ;;  %v2983_v52 = vpop.f32.mrf.mxu1 }
 0x16a   :  { %v2474_v3 = vsel %vm2437_vm11, %v2301_v14, -inf  ;;  %v2003_v18 = vadd.f32 %v1839_v45, %v7431_v0  ;;  %v1521_v14 = vcombine.high %v1273_v41, %v1273_v41  ;;  %v1528_v45 = vrot.slane %v1273_v41, %v5040_v40 }
 0x16b   :  { %v2476_v9 = vmax.f32 %v2474_v3, %v2475_v26  ;;  %v1846_v44 = vsel %vm5601_vm10, %v7436_v56, %v7434_v30  ;;  %v2068_v47 = vadd.f32 %v2004_v31, %v1553_v5  ;;  %v1554_v3 = vcombine.high %v1552_v53, %v1552_v53  ;;  %v7438_v5 = vld [vmem:[#allocation59_spill] sm:$0xff] }
 0x16c   :  { %v2067_v6 = vadd.f32 %v2003_v18, %v1545_v15  ;;  %v6238_v26 = vmax.f32 %v2471_v13, %v2472_v46  ;;  %v1535_v12 = vrot.slane %v1521_v14, %v5040_v40  ;;  %v6244_v15 = vrot.slane %v7154_v43, 2  ;;  %v7439_v18 = vld [vmem:[#allocation63_spill] sm:$0xff] }
 0x16d   :  { %v2477_v0 = vrot.slane %v2476_v9, 4  ;;  %v2005_v22 = vadd.f32 %v1846_v44, %v7438_v5  ;;  %v3098_v41 = vcombine.high %v6232_v17, %v6232_v17  ;;  %v7440_v62 = vrot.slane %v7439_v18, 7 }
 0x16e   :  { %7437 = vst [vmem:[#allocation10_spill] sm:$0xff] %v6238_v26  ;;  %v2337_v56 = vcombine.low %v2067_v6, %v2068_v47  ;;  %v7441_v53 = vrot.slane %v7402_v38, 2  ;;  %v6256_v31 = vrot.slane %v3083_v51, %v5040_v40  ;;  %v1536_v14 = vcombine.high %v1528_v45, %v1528_v45  ;;  %v7442_v6 = vld [vmem:[#allocation73_spill] sm:$0xff]  ;;  %v7443_v47 = vld [vmem:[#allocation75_spill] sm:$0xff]  ;;  %v7444_v38 = vld [vmem:[#allocation64_spill] sm:$0xff]  ;;  %v4629_v26 = vpop.f32.mrf.mxu0 }
 0x16f   :  { %v2478_v46 = vmax.f32 %v2476_v9, %v2477_v0  ;;  %v1830_v44 = vsel %vm5601_vm10, %v7443_v47, %v7442_v6  ;;  %v6263_v8 = vadd.f32 %v2005_v22, %v1554_v3  ;;  %v1537_v18 = vcombine.high %v1535_v12, %v1535_v12  ;;  %v7447_v0 = vld [vmem:[#allocation76_spill] sm:$0xff]  ;;  %v7449_v22 = vld [vmem:[#allocation65_spill] sm:$0xff] }
 0x170   :  { %v1827_v13 = vsel %vm5601_vm10, %v7441_v53, %v7440_v62  ;;  %v7445_v23 = vrot.slane %v7444_v38, 7  ;;  %v7446_v62 = vrot.slane %v7442_v6, 2  ;;  %v1836_v53 = vsel %vm5601_vm10, %v7447_v0, %v5522_v21 }
 0x171   :  { %v7448_v47 = vcombine.high %v7408_v19, %v7408_v19  ;;  %v2000_v43 = vadd.f32 %v1830_v44, %v7449_v22  ;;  %v6280_v38 = vrot.slane %v3098_v41, 7  ;;  %v7450_v6 = vcombine.high %v7449_v22, %v7449_v22 }
 0x172   :  { %v1833_v51 = vsel %vm5601_vm10, %v7446_v62, %v7445_v23  ;;  %v2002_v62 = vadd.f32 %v1836_v53, %v7430_v4  ;;  %v3066_v9 = vcombine.high %v2983_v52, %v2983_v52  ;;  %v2479_v25 = vrot.slane %v2478_v46, 2 }
 0x173   :  { %v1999_v3 = vadd.f32 %v1827_v13, %v7448_v47  ;;  %v2001_v23 = vadd.f32 %v1833_v51, %v7450_v6  ;;  %v3099_v21 = vcombine.high %v6256_v31, %v6256_v31  ;;  %v2064_v32 = vadd.f32 %v2000_v43, %v1536_v14  ;;  %v7455_v6 = vld [vmem:[#allocation83_spill] sm:$0xff] }
 0x174   :  { %v2066_v13 = vadd.f32 %v2002_v62, %v1537_v18  ;;  %v6289_v44 = vrot.slane %v3066_v9, %v5040_v40  ;;  %v1572_v41 = vcombine.high %v4629_v26, %v4629_v26  ;;  %v7452_v47 = vrot.slane %v6232_v17, 7 }
 0x175   :  { %v2063_v0 = vadd.f32 %v1999_v3, %v1528_v45  ;;  %v2065_v19 = vadd.f32 %v2001_v23, %v1535_v12  ;;  %v6296_v4 = vrot.slane %v2983_v52, %v5040_v40  ;;  %v1579_v53 = vrot.slane %v4629_v26, %v5040_v40  ;;  %v4660_v3 = vpop.f32.mrf.mxu1 }
 0x176   :  { %7451 = vst [vmem:[#allocation12_spill] sm:$0xff] %v6289_v44  ;;  %v6293_v42 = vrot.slane %v7452_v47, 2  ;;  %v2351_v22 = vrot.slane %v2337_v56, %v5040_v40  ;;  %v6302_v14 = vrot.slane %v3099_v21, 9  ;;  %v3082_v9 = vcombine.high %v6289_v44, %v6289_v44 }
 0x177   :  { %v2320_v51 = vcombine.low %v2063_v0, %v2064_v32  ;;  %v2336_v12 = vcombine.low %v2065_v19, %v2066_v13  ;;  %v1587_v32 = vcombine.high %v1579_v53, %v1579_v53  ;;  %v6307_v52 = vmax.f32 %v2478_v46, %v2479_v25  ;;  %v7456_v0 = vld [vmem:[#allocation74_spill] sm:$0xff]  ;;  %v7459_v46 = vld [vmem:[#allocation68_spill] sm:$0xff] }
 0x178   :  { %7453 = vst [vmem:[#allocation18_spill] sm:$0xff] %v6302_v14  ;;  %v1586_v56 = vrot.slane %v1572_v41, %v5040_v40  ;;  %v1864_v23 = vsel %vm5601_vm10, %v7455_v6, %v5535_v61  ;;  %v3081_v21 = vcombine.high %v6296_v4, %v6296_v4  ;;  %v7457_v19 = vrot.slane %v7456_v0, 7  ;;  %v1283_v41 = vpop.f32.mrf.mxu0  ;;  %v7461_v0 = vld [vmem:[#allocation69_spill] sm:$0xff] }
 0x179   :  { %v2334_v18 = vrot.slane %v2320_v51, %v5040_v40  ;;  %7454 = vst [vmem:[#allocation29_spill] sm:$0xff] %v6307_v52  ;;  %v2344_v26 = vrot.slane %v2336_v12, %v5040_v40  ;;  %v7458_v13 = vrot.slane %v5535_v61, 2  ;;  %v2011_v47 = vadd.f32 %v1864_v23, %v7459_v46 }
 0x17a   :  { %v7161_v12 = vrot.slane %v6296_v4, 7  ;;  %v7460_v6 = vcombine.high %v7459_v46, %v7459_v46  ;;  %v6330_v45 = vrot.slane %v3082_v9, 7  ;;  %v7462_v61 = vrot.slane %v7461_v0, 7 }
 0x17b   :  { %v2335_v62 = vcombine.low %v6192_v1, %v2334_v18  ;;  %v1867_v25 = vsel %vm5601_vm10, %v7458_v13, %v7457_v19  ;;  %v2352_v51 = vcombine.low %v2344_v26, %v2351_v22  ;;  %v3117_v18 = vcombine.high %v4660_v3, %v4660_v3 }
 0x17c   :  { %v2012_v1 = vadd.f32 %v1867_v25, %v7460_v6  ;;  %v7464_v14 = vrot.slane %v7463_v58, 2  ;;  %v2075_v19 = vadd.f32 %v2011_v47, %v1587_v32  ;;  %v6340_v13 = vrot.slane %v4660_v3, %v5040_v40 }
 0x17d   :  { %v2483_v43 = vsel %vm2437_vm11, %v2335_v62, -inf  ;;  %v2484_v22 = vsel %vm2437_vm11, %v2352_v51, -inf  ;;  %v1555_v25 = vcombine.high %v1283_v41, %v1283_v41  ;;  %v6343_v9 = vrot.slane %v3081_v21, 7 }
 0x17e   :  { %v1861_v23 = vsel %vm5601_vm10, %v7464_v14, %v7462_v61  ;;  %v2076_v26 = vadd.f32 %v2012_v1, %v1586_v56  ;;  %v2485_v62 = vmax.f32 %v2483_v43, %v2484_v22  ;;  %v1562_v6 = vrot.slane %v1283_v41, %v5040_v40  ;;  %v7467_v14 = vld [vmem:[#allocation79_spill] sm:$0xff]  ;;  %v7469_v1 = vld [vmem:[#allocation77_spill] sm:$0xff]  ;;  %v7473_v43 = vld [vmem:[#allocation86_spill] sm:$0xff] }
 0x17f   :  { %7465 = vst [vmem:[#allocation32_spill] sm:$0xff] %v6343_v9  ;;  %v6348_v0 = vrot.slane %v7161_v12, 2  ;;  %v7468_v32 = vcombine.high %v7467_v14, %v7467_v14  ;;  %v6354_v56 = vrot.slane %v3117_v18, %v5040_v40  ;;  %v1569_v3 = vrot.slane %v1555_v25, %v5040_v40 }
 0x180   :  { %v2486_v51 = vrot.slane %v2485_v62, 4  ;;  %v7470_v41 = vrot.slane %v7469_v1, 7  ;;  %v7471_v61 = vrot.slane %v7434_v30, 2  ;;  %v2371_v12 = vcombine.low %v2075_v19, %v2076_v26  ;;  %v7474_v1 = vld [vmem:[#allocation80_spill] sm:$0xff]  ;;  %v7477_v26 = vld [vmem:[#allocation89_spill] sm:$0xff] }
 0x181   :  { %7466 = vst [vmem:[#allocation24_spill] sm:$0xff] %v6348_v0  ;;  %v2010_v47 = vadd.f32 %v1861_v23, %v7468_v32  ;;  %v3132_v18 = vcombine.high %v6340_v13, %v6340_v13  ;;  %v1570_v23 = vcombine.high %v1562_v6, %v1562_v6  ;;  %v2993_v32 = vpop.f32.mrf.mxu1  ;;  %v1571_v52 = vcombine.high %v1569_v3, %v1569_v3 }
 0x182   :  { %v1849_v22 = vsel %vm5601_vm10, %v7471_v61, %v7470_v41  ;;  %v2487_v25 = vmax.f32 %v2485_v62, %v2486_v51  ;;  %v1852_v21 = vsel %vm5601_vm10, %v7473_v43, %v7472_v59  ;;  %v7475_v34 = vrot.slane %v7474_v1, 7  ;;  %v7479_v43 = vld [vmem:[#allocation78_spill] sm:$0xff]  ;;  %v4632_v61 = vpop.f32.mrf.mxu0 }
 0x183   :  { %v2074_v46 = vadd.f32 %v2010_v47, %v1579_v53  ;;  %v7476_v30 = vrot.slane %v7472_v59, 2  ;;  %v3133_v19 = vcombine.high %v6354_v56, %v6354_v56  ;;  %v1858_v62 = vsel %vm5601_vm10, %v7477_v26, %v7463_v58 }
 0x184   :  { %v7478_v47 = vcombine.high %v7438_v5, %v7438_v5  ;;  %v2007_v41 = vadd.f32 %v1852_v21, %v7479_v43  ;;  %v3100_v2 = vcombine.high %v2993_v32, %v2993_v32  ;;  %v2488_v44 = vrot.slane %v2487_v25, 2 }
 0x185   :  { %v1855_v53 = vsel %vm5601_vm10, %v7476_v30, %v7475_v34  ;;  %v7480_v34 = vcombine.high %v7479_v43, %v7479_v43  ;;  %v2009_v30 = vadd.f32 %v1858_v62, %v7467_v14  ;;  %v6393_v58 = vrot.slane %v2993_v32, %v5040_v40 }
 0x186   :  { %v2006_v51 = vadd.f32 %v1849_v22, %v7478_v47  ;;  %v2071_v9 = vadd.f32 %v2007_v41, %v1570_v23  ;;  %v1605_v26 = vcombine.high %v4632_v61, %v4632_v61  ;;  %v6398_v59 = vrot.slane %v3100_v2, %v5040_v40 }
 0x187   :  { %v2008_v1 = vadd.f32 %v1855_v53, %v7480_v34  ;;  %v2073_v21 = vadd.f32 %v2009_v30, %v1571_v52  ;;  %v3115_v14 = vcombine.high %v6393_v58, %v6393_v58  ;;  %v1612_v53 = vrot.slane %v4632_v61, %v5040_v40 }
 0x188   :  { %v2070_v0 = vadd.f32 %v2006_v51, %v1562_v6  ;;  %v2385_v6 = vrot.slane %v2371_v12, %v5040_v40  ;;  %v6404_v23 = vrot.slane %v3132_v18, 7  ;;  %v6406_v51 = vmax.f32 %v2487_v25, %v2488_v44  ;;  %v7485_v25 = vld [vmem:[#allocation82_spill] sm:$0xff] }
 0x189   :  { %v2072_v22 = vadd.f32 %v2008_v1, %v1569_v3  ;;  %v2370_v62 = vcombine.low %v2073_v21, %v2074_v46  ;;  %v7482_v52 = vrot.slane %v6354_v56, 7  ;;  %v1619_v18 = vrot.slane %v1605_v26, %v5040_v40  ;;  %v4663_v26 = vpop.f32.mrf.mxu1 }
 0x18a   :  { %v2353_v47 = vcombine.low %v6263_v8, %v2070_v0  ;;  %7481 = vst [vmem:[#allocation8_spill] sm:$0xff] %v6406_v51  ;;  %v6412_v8 = vrot.slane %v3133_v19, 7  ;;  %v3116_v44 = vcombine.high %v6398_v59, %v6398_v59  ;;  %v6421_v46 = vrot.slane %v3115_v14, 7 }
 0x18b   :  { %v2354_v32 = vcombine.low %v2071_v9, %v2072_v22  ;;  %v6410_v3 = vrot.slane %v7482_v52, 2  ;;  %v2378_v12 = vrot.slane %v2370_v62, %v5040_v40  ;;  %v1620_v9 = vcombine.high %v1612_v53, %v1612_v53  ;;  %v7488_v22 = vld [vmem:[#allocation93_spill] sm:$0xff] }
 0x18c   :  { %7484 = vst [vmem:[#allocation35_spill] sm:$0xff] %v6412_v8  ;;  %v2361_v0 = vrot.slane %v2353_v47, %v5040_v40  ;;  %v7486_v41 = vrot.slane %v7485_v25, 7  ;;  %v7487_v19 = vrot.slane %v5704_v39, 2  ;;  %v1621_v30 = vcombine.high %v1619_v18, %v1619_v18  ;;  %v7491_v52 = vld [vmem:[#allocation81_spill] sm:$0xff] }
 0x18d   :  { %7483 = vst [vmem:[#allocation17_spill] sm:$0xff] %v6410_v3  ;;  %v2368_v43 = vrot.slane %v2354_v32, %v5040_v40  ;;  %v2386_v1 = vcombine.low %v2378_v12, %v2385_v6  ;;  %v1886_v21 = vsel %vm5601_vm10, %v7488_v22, %v5617_v35  ;;  %v7489_v14 = vrot.slane %v5575_v36, 7 }
 0x18e   :  { %v1883_v61 = vsel %vm5601_vm10, %v7487_v19, %v7486_v41  ;;  %v7490_v32 = vrot.slane %v5617_v35, 2  ;;  %v1892_v6 = vsel %vm5601_vm10, %v5664_v60, %v5666_v29  ;;  %v7492_v36 = vcombine.high %v5625_v20, %v5625_v20  ;;  %v7493_v35 = vld [vmem:[#allocation87_spill] sm:$0xff] }
 0x18f   :  { %v2369_v34 = vcombine.low %v2361_v0, %v2368_v43  ;;  %v2018_v0 = vadd.f32 %v1886_v21, %v7491_v52  ;;  %v1293_v43 = vpop.f32.mrf.mxu0  ;;  %v2493_v25 = vsel %vm2437_vm11, %v2386_v1, -inf  ;;  %v2020_v19 = vadd.f32 %v1892_v6, %v7493_v35  ;;  %v7506_v6 = vld [vmem:[#allocation95_spill] sm:$0xff] }
 0x190   :  { %v1889_v62 = vsel %vm5601_vm10, %v7490_v32, %v7489_v14  ;;  %v2017_v41 = vadd.f32 %v1883_v61, %v7492_v36  ;;  %v7494_v14 = vcombine.high %v7491_v52, %v7491_v52  ;;  %v3151_v29 = vcombine.high %v4663_v26, %v4663_v26 }
 0x191   :  { %v2492_v12 = vsel %vm2437_vm11, %v2369_v34, -inf  ;;  %v2082_v5 = vadd.f32 %v2018_v0, %v1620_v9  ;;  %v2084_v21 = vadd.f32 %v2020_v19, %v1621_v30  ;;  %v6455_v47 = vrot.slane %v4663_v26, %v5040_v40  ;;  %v3003_v30 = vpop.f32.mrf.mxu1 }
 0x192   :  { %v2494_v22 = vmax.f32 %v2492_v12, %v2493_v25  ;;  %v2019_v32 = vadd.f32 %v1889_v62, %v7494_v14  ;;  %v2081_v60 = vadd.f32 %v2017_v41, %v1612_v53  ;;  %v1588_v34 = vcombine.high %v1293_v43, %v1293_v43  ;;  %v7507_v25 = vld [vmem:[#allocation72_spill] sm:$0xff] }
 0x193   :  { %v6458_v3 = vrot.slane %v3151_v29, %v5040_v40  ;;  %v1595_v61 = vrot.slane %v1293_v43, %v5040_v40  ;;  %v7495_v26 = vrot.slane %v6393_v58, 7  ;;  %v6469_v0 = vrot.slane %v3116_v44, 7  ;;  %v4666_v9 = vpop.f32.mrf.mxu1 }
 0x194   :  { %v2495_v1 = vrot.slane %v2494_v22, 4  ;;  %v2083_v2 = vadd.f32 %v2019_v32, %v1619_v18  ;;  %v1602_v53 = vrot.slane %v1588_v34, %v5040_v40  ;;  %v2404_v18 = vcombine.low %v2081_v60, %v2082_v5  ;;  %v7499_v32 = vld [vmem:[#allocation91_spill] sm:$0xff] }
 0x195   :  { %v6467_v62 = vrot.slane %v7495_v26, 2  ;;  %v7496_v43 = vrot.slane %v6398_v59, 7  ;;  %v3166_v41 = vcombine.high %v6455_v47, %v6455_v47  ;;  %v3167_v35 = vcombine.high %v6458_v3, %v6458_v3  ;;  %v7503_v26 = vld [vmem:[#allocation92_spill] sm:$0xff] }
 0x196   :  { %v2405_v12 = vcombine.low %v2083_v2, %v2084_v21  ;;  %v6480_v19 = vmax.f32 %v2494_v22, %v2495_v1  ;;  %v1603_v44 = vcombine.high %v1595_v61, %v1595_v61  ;;  %v7500_v5 = vrot.slane %v7499_v32, 7  ;;  %v7501_v2 = vld [vmem:[#allocation85_spill] sm:$0xff]  ;;  %v7502_v21 = vld [vmem:[#allocation94_spill] sm:$0xff] }
 0x197   :  { %v6474_v36 = vrot.slane %v7496_v43, 2  ;;  %v1604_v60 = vcombine.high %v1602_v53, %v1602_v53  ;;  %v1874_v34 = vsel %vm5601_vm10, %v7502_v21, %v5679_v48  ;;  %v7504_v43 = vrot.slane %v7503_v26, 7  ;;  %v7509_v26 = vld [vmem:[#allocation90_spill] sm:$0xff] }
 0x198   :  { %7498 = vst [vmem:[#allocation31_spill] sm:$0xff] %v6480_v19  ;;  %v1871_v29 = vsel %vm5601_vm10, %v7501_v2, %v7500_v5  ;;  %v7505_v22 = vrot.slane %v5679_v48, 2  ;;  %v1880_v32 = vsel %vm5601_vm10, %v7506_v6, %v5704_v39  ;;  %v2412_v5 = vrot.slane %v2404_v18, %v5040_v40 }
 0x199   :  { %7497 = vst [vmem:[#allocation27_spill] sm:$0xff] %v6474_v36  ;;  %v2419_v2 = vrot.slane %v2405_v12, %v5040_v40  ;;  %v7508_v21 = vcombine.high %v7507_v25, %v7507_v25  ;;  %v2014_v14 = vadd.f32 %v1874_v34, %v7509_v26  ;;  %v6508_v48 = vrot.slane %v3167_v35, 7 }
 0x19a   :  { %v1877_v1 = vsel %vm5601_vm10, %v7505_v22, %v7504_v43  ;;  %v7510_v43 = vcombine.high %v7509_v26, %v7509_v26  ;;  %v2016_v51 = vadd.f32 %v1880_v32, %v5625_v20  ;;  %v3134_v39 = vcombine.high %v3003_v30, %v3003_v30 }
 0x19b   :  { %v2013_v52 = vadd.f32 %v1871_v29, %v7508_v21  ;;  %v2078_v8 = vadd.f32 %v2014_v14, %v1603_v44  ;;  %v6515_v18 = vrot.slane %v3003_v30, %v5040_v40  ;;  %v3185_v12 = vcombine.high %v4666_v9, %v4666_v9  ;;  %v4671_v30 = vpop.f32.mrf.mxu0 }
 0x19c   :  { %v2015_v22 = vadd.f32 %v1877_v1, %v7510_v43  ;;  %v2080_v25 = vadd.f32 %v2016_v51, %v1604_v60  ;;  %v6518_v29 = vrot.slane %v3134_v39, %v5040_v40  ;;  %v6521_v35 = vrot.slane %v4666_v9, %v5040_v40 }
 0x19d   :  { %v2077_v6 = vadd.f32 %v2013_v52, %v1595_v61  ;;  %v2420_v34 = vcombine.low %v2412_v5, %v2419_v2  ;;  %v3149_v20 = vcombine.high %v6515_v18, %v6515_v18  ;;  %v6530_v51 = vrot.slane %v3185_v12, %v5040_v40 }
 0x19e   :  { %v2079_v36 = vadd.f32 %v2015_v22, %v1602_v53  ;;  %v3150_v52 = vcombine.high %v6518_v29, %v6518_v29  ;;  %v7174_v53 = vrot.slane %v6518_v29, 7  ;;  %v7511_v9 = vrot.slane %v6455_v47, 7 }
 0x19f   :  { %v2387_v21 = vcombine.low %v2077_v6, %v2078_v8  ;;  %v6536_v44 = vrot.slane %v3166_v41, 7  ;;  %v3200_v8 = vcombine.high %v6521_v35, %v6521_v35  ;;  %v2502_v26 = vsel %vm2437_vm11, %v2420_v34, -inf }
 0x1a0   :  { %v2388_v61 = vcombine.low %v2079_v36, %v2080_v25  ;;  %v6534_v14 = vrot.slane %v7511_v9, 2  ;;  %v7175_v36 = vrot.slane %v6521_v35, 7  ;;  %v6547_v22 = vrot.slane %v3149_v20, 9 }
 0x1a1   :  { %v2395_v5 = vrot.slane %v2387_v21, %v5040_v40  ;;  %v3349_v41 = vcombine.high %v4671_v30, %v4671_v30  ;;  %v6551_v6 = vrot.slane %v7174_v53, 2  ;;  %v6553_v12 = vrot.slane %v3150_v52, 7  ;;  %v3013_v21 = vpop.f32.mrf.mxu1 }
 0x1a2   :  { %v2402_v2 = vrot.slane %v2388_v61, %v5040_v40  ;;  %v3201_v25 = vcombine.high %v6530_v51, %v6530_v51  ;;  %v6559_v61 = vrot.slane %v7175_v36, 2  ;;  %v6561_v34 = vrot.slane %v3200_v8, 7 }
 0x1a3   :  { %v3363_v9 = vrot.slane %v3349_v41, %v5040_v40  ;;  %v7512_v52 = vrot.slane %v6117_v49, 7  ;;  %v7513_v60 = vrot.slane %v6236_v55, 2  ;;  %v7514_v53 = vrot.slane %v6124_v37, 7 }
 0x1a4   :  { %v2403_v39 = vcombine.low %v2395_v5, %v2402_v2  ;;  %v3273_v5 = vpop.f32.mrf.mxu0  ;;  %v3549_v41 = vsel %vm5601_vm10, %v6198_v24, %v6179_v16  ;;  %v3168_v43 = vcombine.high %v3013_v21, %v3013_v21  ;;  %v6582_v1 = vrot.slane %v3201_v25, 7 }
 0x1a5   :  { %v3542_v32 = vsel %vm5601_vm10, %v7513_v60, %v7512_v52  ;;  %v3546_v8 = vsel %vm5601_vm10, %v6181_v27, %v7514_v53  ;;  %v3671_v49 = vadd.f32 %v3549_v41, %v5717_v50  ;;  %v3356_v60 = vrot.slane %v4671_v30, %v5040_v40 }
 0x1a6   :  { %v2501_v2 = vsel %vm2437_vm11, %v2403_v39, -inf  ;;  %v3364_v39 = vcombine.high %v3363_v9, %v3363_v9  ;;  %v6586_v37 = vrot.slane %v3013_v21, %v5040_v40  ;;  %v3332_v52 = vcombine.high %v3273_v5, %v3273_v5 }
 0x1a7   :  { %v2503_v36 = vmax.f32 %v2501_v2, %v2502_v26  ;;  %v7515_v27 = vcombine.high %v5713_v54, %v5713_v54  ;;  %v3339_v24 = vrot.slane %v3273_v5, %v5040_v40  ;;  %v7516_v25 = vcombine.high %v5788_v7, %v5788_v7 }
 0x1a8   :  { %v6591_v19 = vadd.f32 %v3671_v49, %v3364_v39  ;;  %v6599_v30 = vrot.slane %v3168_v43, %v5040_v40  ;;  %v3346_v21 = vrot.slane %v3332_v52, %v5040_v40  ;;  %v7517_v54 = vrot.slane %v6530_v51, 7 }
 0x1a9   :  { %v2504_v20 = vrot.slane %v2503_v36, 4  ;;  %v3670_v53 = vadd.f32 %v3546_v8, %v7515_v27  ;;  %v3669_v2 = vadd.f32 %v3542_v32, %v7516_v25  ;;  %v7518_v5 = vrot.slane %v6173_v11, 9  ;;  %v4674_v32 = vpop.f32.mrf.mxu0 }
 0x1aa   :  { %v6605_v8 = vrot.slane %v7517_v54, 2  ;;  %v3183_v43 = vcombine.high %v6586_v37, %v6586_v37  ;;  %v3613_v52 = vrot.slane %v6586_v37, 7  ;;  %v3347_v25 = vcombine.high %v3339_v24, %v3339_v24 }
 0x1ab   :  { %v6607_v39 = vadd.f32 %v3670_v53, %v3363_v9  ;;  %v3533_v49 = vsel %vm5601_vm10, %v7518_v5, %v6210_v33  ;;  %v3701_v27 = vadd.f32 %v3669_v2, %v3356_v60  ;;  %v6617_v41 = vmax.f32 %v2503_v36, %v2504_v20 }
 0x1ac   :  { %v3348_v53 = vcombine.high %v3346_v21, %v3346_v21  ;;  %v7519_v54 = vrot.slane %v6184_v57, 7  ;;  %v7520_v11 = vrot.slane %v6210_v33, 2  ;;  %v3184_v60 = vcombine.high %v6599_v30, %v6599_v30 }
 0x1ad   :  { %v3779_v9 = vcombine.low %v6607_v39, %v6591_v19  ;;  %v3539_v36 = vsel %vm5601_vm10, %v6244_v15, %v6236_v55  ;;  %v3666_v20 = vadd.f32 %v3533_v49, %v5763_v10  ;;  %v7521_v19 = vcombine.high %v5763_v10, %v5763_v10 }
 0x1ae   :  { %v3536_v5 = vsel %vm5601_vm10, %v7520_v11, %v7519_v54  ;;  %v3668_v33 = vadd.f32 %v3539_v36, %v5788_v7  ;;  %v3382_v2 = vcombine.high %v4674_v32, %v4674_v32  ;;  %v3389_v39 = vrot.slane %v4674_v32, %v5040_v40  ;;  %v3283_v54 = vpop.f32.mrf.mxu0 }
 0x1af   :  { %v3667_v24 = vadd.f32 %v3536_v5, %v7521_v19  ;;  %v3698_v11 = vadd.f32 %v3666_v20, %v3347_v25  ;;  %v3565_v55 = vsel %vm5601_vm10, %v6293_v42, %v6280_v38  ;;  %v7522_v15 = vrot.slane %v6256_v31, 7 }
 0x1b0   :  { %v7523_v10 = vrot.slane %v6280_v38, 2  ;;  %v6652_v7 = vrot.slane %v3613_v52, 2  ;;  %v3700_v32 = vadd.f32 %v3668_v33, %v3348_v53  ;;  %v3396_v25 = vrot.slane %v3382_v2, %v5040_v40 }
 0x1b1   :  { %v3699_v26 = vadd.f32 %v3667_v24, %v3346_v21  ;;  %v3397_v21 = vcombine.high %v3389_v39, %v3389_v39  ;;  %v3676_v36 = vadd.f32 %v3565_v55, %v5800_v28  ;;  %v7524_v42 = vcombine.high %v5800_v28, %v5800_v28  ;;  %v4677_v55 = vpop.f32.mrf.mxu0 }
 0x1b2   :  { %v3568_v49 = vsel %vm5601_vm10, %v7523_v10, %v7522_v15  ;;  %v3365_v20 = vcombine.high %v3283_v54, %v3283_v54  ;;  %v3763_v38 = vcombine.low %v3700_v32, %v3701_v27  ;;  %v7525_v19 = vrot.slane %v6232_v17, 7  ;;  %v7529_v32 = vld [vmem:[#allocation32_spill] sm:$0xff] }
 0x1b3   :  { %v3762_v5 = vcombine.low %v3698_v11, %v3699_v26  ;;  %v3677_v31 = vadd.f32 %v3568_v49, %v7524_v42  ;;  %v7526_v24 = vrot.slane %v6330_v45, 2  ;;  %v3372_v53 = vrot.slane %v3283_v54, %v5040_v40  ;;  %v7530_v42 = vld [vmem:[#allocation24_spill] sm:$0xff] }
 0x1b4   :  { %v7527_v33 = vrot.slane %v6296_v4, 7  ;;  %v7528_v26 = vrot.slane %v6179_v16, 2  ;;  %v3708_v11 = vadd.f32 %v3676_v36, %v3397_v21  ;;  %v3379_v17 = vrot.slane %v3365_v20, %v5040_v40  ;;  %v7531_v16 = vld [vmem:[#allocation12_spill] sm:$0xff] }
 0x1b5   :  { %v3562_v15 = vsel %vm5601_vm10, %v7526_v24, %v7525_v19  ;;  %v3770_v28 = vrot.slane %v3762_v5, %v5040_v40  ;;  %v3709_v27 = vadd.f32 %v3677_v31, %v3396_v25  ;;  %v3777_v10 = vrot.slane %v3763_v38, %v5040_v40  ;;  %v7533_v5 = vld [vmem:[#allocation98_spill] sm:$0xff]  ;;  %v7536_v38 = vld [vmem:[#allocation97_spill] sm:$0xff] }
 0x1b6   :  { %v3552_v2 = vsel %vm5601_vm10, %v7528_v26, %v7527_v33  ;;  %v3380_v49 = vcombine.high %v3372_v53, %v3372_v53  ;;  %v3555_v4 = vsel %vm5601_vm10, %v7530_v42, %v7529_v32  ;;  %v7532_v54 = vrot.slane %v7531_v16, 9 }
 0x1b7   :  { %v7534_v25 = vcombine.high %v7533_v5, %v7533_v5  ;;  %v3381_v36 = vcombine.high %v3379_v17, %v3379_v17  ;;  %v7535_v31 = vcombine.high %v5717_v50, %v5717_v50  ;;  %v7537_v24 = vrot.slane %v7536_v38, %v5040_v40 }
 0x1b8   :  { %v3559_v19 = vsel %vm5601_vm10, %v7532_v54, %v6330_v45  ;;  %v3778_v26 = vcombine.low %v3770_v28, %v3777_v10  ;;  %v3415_v42 = vcombine.high %v4677_v55, %v4677_v55  ;;  %v3422_v16 = vrot.slane %v4677_v55, %v5040_v40 }
 0x1b9   :  { %v3675_v21 = vadd.f32 %v3562_v15, %v7534_v25  ;;  %v3672_v20 = vadd.f32 %v3552_v2, %v7535_v31  ;;  %v3673_v33 = vadd.f32 %v3555_v4, %v7537_v24  ;;  %v3674_v32 = vadd.f32 %v3559_v19, %v7533_v5  ;;  %v3293_v2 = vpop.f32.mrf.mxu0 }
 0x1ba   :  { %v3797_v45 = vcombine.low %v3708_v11, %v3709_v27  ;;  %v7538_v15 = vrot.slane %v6340_v13, 9  ;;  %v3906_v17 = vsel %vm2437_vm11, %v3778_v26, -inf  ;;  %v3430_v28 = vcombine.high %v3422_v16, %v3422_v16 }
 0x1bb   :  { %v3704_v54 = vadd.f32 %v3672_v20, %v3372_v53  ;;  %v3705_v57 = vadd.f32 %v3673_v33, %v3380_v49  ;;  %v3707_v25 = vadd.f32 %v3675_v21, %v3389_v39  ;;  %v3706_v4 = vadd.f32 %v3674_v32, %v3381_v36  ;;  %v7541_v49 = vld [vmem:[#allocation9_spill] sm:$0xff] }
 0x1bc   :  { %v3585_v50 = vsel %vm5601_vm10, %v7538_v15, %v6404_v23  ;;  %v3787_v10 = vrot.slane %v3779_v9, %v5040_v40  ;;  %v3907_v19 = vrot.slane %v3906_v17, 4  ;;  %v7539_v11 = vrot.slane %v6354_v56, 7 }
 0x1bd   :  { %v3780_v5 = vcombine.low %v3704_v54, %v3705_v57  ;;  %v7540_v53 = vrot.slane %v6404_v23, 2  ;;  %v3796_v27 = vcombine.low %v3706_v4, %v3707_v25  ;;  %v6709_v55 = vrot.slane %v3415_v42, %v5040_v40  ;;  %v7544_v42 = vld [vmem:[#allocation18_spill] sm:$0xff] }
 0x1be   :  { %v3682_v31 = vadd.f32 %v3585_v50, %v7541_v49  ;;  %v3398_v39 = vcombine.high %v3293_v2, %v3293_v2  ;;  %v3908_v21 = vmax.f32 %v3906_v17, %v3907_v19  ;;  %v3811_v36 = vrot.slane %v3797_v45, %v5040_v40  ;;  %v4680_v19 = vpop.f32.mrf.mxu0 }
 0x1bf   :  { %v3588_v13 = vsel %vm5601_vm10, %v7540_v53, %v7539_v11  ;;  %v3794_v9 = vrot.slane %v3780_v5, %v5040_v40  ;;  %v3405_v57 = vrot.slane %v3293_v2, %v5040_v40  ;;  %v3804_v56 = vrot.slane %v3796_v27, %v5040_v40  ;;  %v7548_v53 = vld [vmem:[#allocation96_spill] sm:$0xff] }
 0x1c0   :  { %v7542_v23 = vcombine.high %v7541_v49, %v7541_v49  ;;  %v3714_v38 = vadd.f32 %v3682_v31, %v3430_v28  ;;  %v3412_v24 = vrot.slane %v3398_v39, %v5040_v40  ;;  %v3909_v33 = vrot.slane %v3908_v21, 2 }
 0x1c1   :  { %v3795_v26 = vcombine.low %v3787_v10, %v3794_v9  ;;  %v7543_v32 = vrot.slane %v6393_v58, 7  ;;  %v3575_v45 = vsel %vm5601_vm10, %v6467_v62, %v6421_v46  ;;  %v3812_v54 = vcombine.low %v3804_v56, %v3811_v36  ;;  %v7547_v10 = vld [vmem:[#allocation27_spill] sm:$0xff]  ;;  %v7552_v36 = vld [vmem:[#allocation36_spill] sm:$0xff] }
 0x1c2   :  { %v3683_v20 = vadd.f32 %v3588_v13, %v7542_v23  ;;  %v3413_v50 = vcombine.high %v3405_v57, %v3405_v57  ;;  %v7545_v2 = vrot.slane %v6398_v59, 7  ;;  %v7546_v17 = vrot.slane %v6421_v46, 2  ;;  %v7550_v13 = vld [vmem:[#allocation11_spill] sm:$0xff] }
 0x1c3   :  { %v3572_v16 = vsel %vm5601_vm10, %v7544_v42, %v7543_v32  ;;  %v3910_v25 = vmax.f32 %v3908_v21, %v3909_v33  ;;  %v3913_v4 = vsel %vm2437_vm11, %v3795_v26, -inf  ;;  %v3414_v28 = vcombine.high %v3412_v24, %v3412_v24 }
 0x1c4   :  { %v3715_v15 = vadd.f32 %v3683_v20, %v6709_v55  ;;  %v3578_v58 = vsel %vm5601_vm10, %v7546_v17, %v7545_v2  ;;  %v3581_v62 = vsel %vm5601_vm10, %v7547_v10, %v6469_v0  ;;  %v3914_v5 = vrot.slane %v3913_v4, 4 }
 0x1c5   :  { %v3920_v11 = vsel %vm2437_vm11, %v3812_v54, -inf  ;;  %v7549_v59 = vcombine.high %v7548_v53, %v7548_v53  ;;  %v3679_v27 = vadd.f32 %v3575_v45, %v7550_v13  ;;  %v3911_v49 = vrot.slane %v3910_v25, 1 }
 0x1c6   :  { %v3921_v31 = vrot.slane %v3920_v11, 4  ;;  %v7551_v39 = vcombine.high %v7550_v13, %v7550_v13  ;;  %v3681_v9 = vadd.f32 %v3581_v62, %v7552_v36  ;;  %v3915_v56 = vmax.f32 %v3913_v4, %v3914_v5  ;;  %v3303_v62 = vpop.f32.mrf.mxu0 }
 0x1c7   :  { %v3678_v46 = vadd.f32 %v3572_v16, %v7549_v59  ;;  %v3711_v23 = vadd.f32 %v3679_v27, %v3413_v50  ;;  %v3448_v20 = vcombine.high %v4680_v19, %v4680_v19  ;;  %v6753_v33 = vrot.slane %v3183_v43, 7  ;;  %v7555_v59 = vld [vmem:[#allocation19_spill] sm:$0xff] }
 0x1c8   :  { %v3680_v21 = vadd.f32 %v3578_v58, %v7551_v39  ;;  %v3922_v26 = vmax.f32 %v3920_v11, %v3921_v31  ;;  %v3713_v42 = vadd.f32 %v3681_v9, %v3414_v28  ;;  %v6758_v16 = vrot.slane %v3184_v60, 9  ;;  %v7558_v39 = vld [vmem:[#allocation25_spill] sm:$0xff] }
 0x1c9   :  { %v3710_v0 = vadd.f32 %v3678_v46, %v3405_v57  ;;  %v3916_v45 = vrot.slane %v3915_v56, 2  ;;  %v3455_v2 = vrot.slane %v4680_v19, %v5040_v40  ;;  %v3912_v57 = vmax.f32 %v3910_v25, %v3911_v49  ;;  %v6771_v19 = vld [vmem:[%s7026_s5] ss:$0 sm:$0xff] }
 0x1ca   :  { %v3712_v32 = vadd.f32 %v3680_v21, %v3412_v24  ;;  %v3923_v50 = vrot.slane %v3922_v26, 2  ;;  %v3830_v17 = vcombine.low %v3714_v38, %v3715_v15  ;;  %v3462_v43 = vrot.slane %v3448_v20, %v5040_v40 }
 0x1cb   :  { %v3813_v54 = vcombine.low %v3710_v0, %v3711_v23  ;;  %v3917_v4 = vmax.f32 %v3915_v56, %v3916_v45  ;;  %v3463_v10 = vcombine.high %v3455_v2, %v3455_v2  ;;  %v7553_v24 = vrot.slane %v6455_v47, 7 }
 0x1cc   :  { %v3814_v58 = vcombine.low %v3712_v32, %v3713_v42  ;;  %v7554_v28 = vrot.slane %v6553_v12, 2  ;;  %v3924_v25 = vmax.f32 %v3922_v26, %v3923_v50  ;;  %v3607_v47 = vsel %vm5601_vm10, %v6534_v14, %v6536_v44  ;;  %v7560_v42 = vld [vmem:[#allocation13_spill] sm:$0xff] }
 0x1cd   :  { %v3821_v38 = vrot.slane %v3813_v54, %v5040_v40  ;;  %v3618_v5 = vrot.slane %v6753_v33, 2  ;;  %v3918_v11 = vrot.slane %v3917_v4, 1  ;;  %v3431_v53 = vcombine.high %v6709_v55, %v6709_v55  ;;  %v7561_v54 = vld [vmem:[#allocation35_spill] sm:$0xff]  ;;  %v7562_v50 = vld [vmem:[#allocation17_spill] sm:$0xff] }
 0x1ce   :  { %v3604_v60 = vsel %vm5601_vm10, %v7554_v28, %v7553_v24  ;;  %v3828_v15 = vrot.slane %v3814_v58, %v5040_v40  ;;  %v7556_v46 = vrot.slane %v7555_v59, %v5040_v40  ;;  %v7557_v49 = vrot.slane %v6458_v3, 9  ;;  %v4683_v28 = vpop.f32.mrf.mxu0 }
 0x1cf   :  { %v7559_v14 = vcombine.high %v7558_v39, %v7558_v39  ;;  %v3432_v21 = vcombine.high %v3303_v62, %v3303_v62  ;;  %v6794_v36 = vadd.f32 %v6771_v19, %v3912_v57  ;;  %v3925_v55 = vrot.slane %v3924_v25, 1 }
 0x1d0   :  { %v3689_v13 = vadd.f32 %v3607_v47, %v7556_v46  ;;  %v3829_v27 = vcombine.low %v3821_v38, %v3828_v15  ;;  %v3611_v31 = vsel %vm5601_vm10, %v7557_v49, %v6508_v48  ;;  %v3838_v9 = vrot.slane %v3830_v17, %v5040_v40  ;;  %v7566_v47 = vld [vmem:[#allocation20_spill] sm:$0xff]  ;;  %v7568_v46 = vld [vmem:[#allocation22_spill] sm:$0xff] }
 0x1d1   :  { %v3688_v44 = vadd.f32 %v3604_v60, %v7559_v14  ;;  %v3464_v23 = vcombine.high %v3462_v43, %v3462_v43  ;;  %v3446_v3 = vrot.slane %v3432_v21, %v5040_v40  ;;  %v3919_v26 = vmax.f32 %v3917_v4, %v3918_v11 }
 0x1d2   :  { %v3721_v56 = vadd.f32 %v3689_v13, %v3463_v10  ;;  %v3927_v0 = vsel %vm2437_vm11, %v3829_v27, -inf  ;;  %v3690_v45 = vadd.f32 %v3611_v31, %v7560_v42  ;;  %v3591_v57 = vsel %vm5601_vm10, %v7562_v50, %v7561_v54 }
 0x1d3   :  { %v3720_v20 = vadd.f32 %v3688_v44, %v3455_v2  ;;  %v3928_v32 = vrot.slane %v3927_v0, 4  ;;  %v3439_v24 = vrot.slane %v3303_v62, %v5040_v40  ;;  %v7563_v17 = vrot.slane %v6515_v18, 7 }
 0x1d4   :  { %v7564_v10 = vrot.slane %v7561_v54, 2  ;;  %v7565_v4 = vrot.slane %v6518_v29, 7  ;;  %v3926_v60 = vmax.f32 %v3924_v25, %v3925_v55  ;;  %v3447_v15 = vcombine.high %v3446_v3, %v3446_v3 }
 0x1d5   :  { %v3848_v58 = vcombine.low %v3720_v20, %v3721_v56  ;;  %v3929_v38 = vmax.f32 %v3927_v0, %v3928_v32  ;;  %v3601_v18 = vsel %vm5601_vm10, %v6551_v6, %v6553_v12  ;;  %v6820_v62 = vadd.f32 %v3690_v45, %v3464_v23 }
 0x1d6   :  { %v3594_v2 = vsel %vm5601_vm10, %v7564_v10, %v7563_v17  ;;  %v3598_v43 = vsel %vm5601_vm10, %v6547_v22, %v7565_v4  ;;  %v3684_v11 = vadd.f32 %v3591_v57, %v7566_v47  ;;  %v7567_v29 = vcombine.high %v7566_v47, %v7566_v47  ;;  %v3313_v57 = vpop.f32.mrf.mxu0 }
 0x1d7   :  { %v7569_v22 = vcombine.high %v7568_v46, %v7568_v46  ;;  %v6830_v25 = vadd.f32 %v6771_v19, %v3919_v26  ;;  %v3930_v27 = vrot.slane %v3929_v38, 2  ;;  %v3687_v49 = vadd.f32 %v3601_v18, %v7558_v39 }
 0x1d8   :  { %v3685_v59 = vadd.f32 %v3594_v2, %v7567_v29  ;;  %v3481_v31 = vcombine.high %v4683_v28, %v4683_v28  ;;  %v3862_v6 = vrot.slane %v3848_v58, %v5040_v40  ;;  %v3716_v12 = vadd.f32 %v3684_v11, %v3431_v53 }
 0x1d9   :  { %v3686_v13 = vadd.f32 %v3598_v43, %v7569_v22  ;;  %v3931_v21 = vmax.f32 %v3929_v38, %v3930_v27  ;;  %v3719_v55 = vadd.f32 %v3687_v49, %v3447_v15  ;;  %v3488_v56 = vrot.slane %v4683_v28, %v5040_v40  ;;  %v7577_v28 = vld [vmem:[#allocation23_spill] sm:$0xff] }
 0x1da   :  { %v3717_v14 = vadd.f32 %v3685_v59, %v3439_v24  ;;  %v3495_v0 = vrot.slane %v3481_v31, %v5040_v40  ;;  %v7570_v20 = vrot.slane %v6521_v35, 7  ;;  %v3627_v53 = vsel %vm5601_vm10, %v6559_v61, %v6561_v34  ;;  %v7573_v61 = vld [vmem:[#allocation15_spill] sm:$0xff] }
 0x1db   :  { %v3718_v44 = vadd.f32 %v3686_v13, %v3446_v3  ;;  %v7571_v39 = vrot.slane %v6530_v51, 7  ;;  %v7572_v3 = vrot.slane %v6561_v34, 2  ;;  %v3932_v45 = vrot.slane %v3931_v21, 1  ;;  %v7575_v34 = vld [vmem:[#allocation14_spill] sm:$0xff] }
 0x1dc   :  { %v3831_v23 = vcombine.low %v3716_v12, %v3717_v14  ;;  %v3624_v26 = vsel %vm5601_vm10, %v6758_v16, %v7570_v20  ;;  %v3496_v50 = vcombine.high %v3488_v56, %v3488_v56  ;;  %v3497_v35 = vcombine.high %v3495_v0, %v3495_v0 }
 0x1dd   :  { %v3630_v32 = vsel %vm5601_vm10, %v7572_v3, %v7571_v39  ;;  %v3847_v54 = vcombine.low %v3718_v44, %v3719_v55  ;;  %v3633_v16 = vsel %vm5601_vm10, %v6605_v8, %v6582_v1  ;;  %v7574_v51 = vcombine.high %v7573_v61, %v7573_v61  ;;  %v3992_v39 = vld [vmem:[%s7028_s7 + $0x18] sm:$0xff] }
 0x1de   :  { %v3845_v58 = vrot.slane %v3831_v23, %v5040_v40  ;;  %v3695_v17 = vadd.f32 %v3627_v53, %v7575_v34  ;;  %v3933_v10 = vmax.f32 %v3931_v21, %v3932_v45  ;;  %v7576_v4 = vcombine.high %v7575_v34, %v7575_v34 }
 0x1df   :  { %v3694_v24 = vadd.f32 %v3624_v26, %v7574_v51  ;;  %v3855_v2 = vrot.slane %v3847_v54, %v5040_v40  ;;  %v3697_v38 = vadd.f32 %v3633_v16, %v7577_v28  ;;  %v3465_v11 = vcombine.high %v3313_v57, %v3313_v57  ;;  %v7581_v26 = vld [vmem:[#allocation21_spill] sm:$0xff] }
 0x1e0   :  { %v3696_v43 = vadd.f32 %v3630_v32, %v7576_v4  ;;  %v3846_v15 = vcombine.low %v3838_v9, %v3845_v58  ;;  %v3727_v47 = vadd.f32 %v3695_v17, %v3496_v50  ;;  %v3971_v1 = vadd.f32 %v6771_v19, %v3926_v60  ;;  %v7583_v58 = vld [vmem:[#allocation31_spill] sm:$0xff]  ;;  %v7585_v28 = vld [vmem:[#allocation29_spill] sm:$0xff] }
 0x1e1   :  { %v3726_v18 = vadd.f32 %v3694_v24, %v3488_v56  ;;  %v3863_v8 = vcombine.low %v3855_v2, %v3862_v6  ;;  %v3729_v59 = vadd.f32 %v3697_v38, %v3497_v35  ;;  %v3978_v46 = vmax.f32 %v6830_v25, 0.0  ;;  %v3990_v17 = vld [vmem:[%s7028_s7 + $0x8] sm:$0xff] }
 0x1e2   :  { %v3728_v29 = vadd.f32 %v3696_v43, %v3495_v0  ;;  %v3934_v22 = vsel %vm2437_vm11, %v3846_v15, -inf  ;;  %v3472_v27 = vrot.slane %v3313_v57, %v5040_v40  ;;  %v3972_v49 = vadd.f32 %v6771_v19, %v3933_v10 }
 0x1e3   :  { %v3881_v13 = vcombine.low %v3726_v18, %v3727_v47  ;;  %v3935_v31 = vrot.slane %v3934_v22, 4  ;;  %v3941_v9 = vsel %vm2437_vm11, %v3863_v8, -inf  ;;  %v3479_v44 = vrot.slane %v3465_v11, %v5040_v40  ;;  %v3989_v11 = vld [vmem:[%s7028_s7] sm:$0xff] }
 0x1e4   :  { %v3882_v12 = vcombine.low %v3728_v29, %v3729_v59  ;;  %v3942_v14 = vrot.slane %v3941_v9, 4  ;;  %v3480_v60 = vcombine.high %v3472_v27, %v3472_v27  ;;  %v7578_v6 = vrot.slane %v6508_v48, 2 }
 0x1e5   :  { %v3936_v21 = vmax.f32 %v3934_v22, %v3935_v31  ;;  %v3889_v55 = vrot.slane %v3881_v13, %v5040_v40  ;;  %v3617_v0 = vsel %vm5601_vm10, %v6652_v7, %v6753_v33  ;;  %v7579_v20 = vrot.slane %v6599_v30, 7 }
 0x1e6   :  { %v3614_v25 = vsel %vm5601_vm10, %v7578_v6, %v3613_v52  ;;  %v3896_v56 = vrot.slane %v3882_v12, %v5040_v40  ;;  %v3943_v23 = vmax.f32 %v3941_v9, %v3942_v14  ;;  %v7580_v37 = vcombine.high %v7560_v42, %v7560_v42  ;;  %v3991_v42 = vld [vmem:[%s7028_s7 + $0x10] sm:$0xff]  ;;  %v4713_v14 = vld [vmem:[%s7024_s3] ss:$0 sm:$0xff] }
 0x1e7   :  { %v3620_v48 = vsel %vm5601_vm10, %v3618_v5, %v7579_v20  ;;  %v3692_v53 = vadd.f32 %v3617_v0, %v7581_v26  ;;  %v3937_v3 = vrot.slane %v3936_v21, 2  ;;  %v7582_v30 = vcombine.high %v7581_v26, %v7581_v26 }
 0x1e8   :  { %v3691_v52 = vadd.f32 %v3614_v25, %v7580_v37  ;;  %v3897_v7 = vcombine.low %v3889_v55, %v3896_v56  ;;  %v3944_v33 = vrot.slane %v3943_v23, 2  ;;  %v4737_v5 = vmov 0.0  }
 0x1e9   :  { %v3693_v32 = vadd.f32 %v3620_v48, %v7582_v30  ;;  %v3724_v63 = vadd.f32 %v3692_v53, %v3480_v60  ;;  %4684 = vmatprep.subr.mxu1 %v4737_v5  ;;  %v3979_v54 = vmax.f32 %v3971_v1, 0.0  ;;  %v3938_v50 = vmax.f32 %v3936_v21, %v3937_v3  ;;  %4692 = vmatprep.mubr.msk.f32.mxu1 %vm4738_vm12, %v4737_v5 }
 0x1ea   :  { %v3723_v45 = vadd.f32 %v3691_v52, %v3472_v27  ;;  %v3955_v35 = vsel %vm2437_vm11, %v3897_v7, -inf  ;;  %4685 = vmatpush3.msra.mxu1 %v3992_v39  ;;  %v7584_v16 = vrot.slane %v7583_v58, 2  ;;  %v3945_v51 = vmax.f32 %v3943_v23, %v3944_v33 }
 0x1eb   :  { %v3725_v57 = vadd.f32 %v3693_v32, %v3479_v44  ;;  %v3956_v24 = vrot.slane %v3955_v35, 4  ;;  %4686 = vmatprep.subr.mxu1 %v4737_v5  ;;  %v2506_v10 = vrot.slane %v6617_v41, 2  ;;  %v3980_v2 = vmax.f32 %v3972_v49, 0.0 }
 0x1ec   :  { %v2498_v61 = vmax.f32 %v7583_v58, %v7584_v16  ;;  %v3864_v34 = vcombine.low %v6820_v62, %v3723_v45  ;;  %v3939_v4 = vrot.slane %v3938_v50, 1  ;;  %4687 = vmatpush3.msra.mxu1 %v3991_v42  ;;  %v7586_v38 = vrot.slane %v7585_v28, 1  ;;  %v7590_v45 = vld [vmem:[#allocation7_spill] sm:$0xff]  ;;  %v7592_v42 = vld [vmem:[#allocation26_spill] sm:$0xff] }
 0x1ed   :  { %v3865_v43 = vcombine.low %v3724_v63, %v3725_v57  ;;  %v3977_v18 = vmax.f32 %v6794_v36, 0.0  ;;  %v3946_v47 = vrot.slane %v3945_v51, 1  ;;  %v3957_v62 = vmax.f32 %v3955_v35, %v3956_v24  ;;  %4688 = vmatprep.subr.mxu1 %v4737_v5  ;;  %v7587_v36 = vld [vmem:[#allocation8_spill] sm:$0xff] }
 0x1ee   :  { %v2482_v15 = vmax.f32 %v7585_v28, %v7586_v38  ;;  %v4001_v1 = vrot.slane %v3978_v46, 7  ;;  %v6924_v8 = vrot.slane %v3979_v54, 6  ;;  %v3872_v29 = vrot.slane %v3864_v34, %v5040_v40  ;;  %4689 = vmatpush3.msra.mxu1 %v3990_v17  ;;  %v7593_v57 = vld [vmem:[#allocation16_spill] sm:$0xff] }
 0x1ef   :  { %v3879_v59 = vrot.slane %v3865_v43, %v5040_v40  ;;  %v3940_v22 = vmax.f32 %v3938_v50, %v3939_v4  ;;  %v3958_v13 = vrot.slane %v3957_v62, 2  ;;  %4690 = vmatprep.subr.mxu1 %v4737_v5  ;;  %v7588_v27 = vrot.slane %v7587_v36, 1  ;;  %v7589_v40 = vld [vmem:[#allocation10_spill] sm:$0xff]  ;;  %v4228_v43 = vld [vmem:[%s7030_s9 + $0x10] sm:$0xff] }
 0x1f0   :  { %v2499_v31 = vrot.slane %v2498_v61, 1  ;;  %v4006_v9 = vrot.slane %v3980_v2, 5  ;;  %4691 = vmatpush3.msra.mxu1 %v3989_v11  ;;  %v2507_v46 = vmax.f32 %v6617_v41, %v2506_v10  ;;  %v2520_v44 = vadd.f32 %v4713_v14, %v7589_v40 }
 0x1f1   :  { %v2491_v49 = vmax.f32 %v7587_v36, %v7588_v27  ;;  %v3880_v12 = vcombine.low %v3872_v29, %v3879_v59  ;;  %v3947_v60 = vmax.f32 %v3945_v51, %v3946_v47  ;;  %v3959_v6 = vmax.f32 %v3957_v62, %v3958_v13  ;;  %4695 = vmatprep.subr.mxu1 %v4737_v5  ;;  %v4229_v13 = vld [vmem:[%s7030_s9 + $0x18] sm:$0xff] }
 0x1f2   :  { %v2500_v25 = vmax.f32 %v2498_v61, %v2499_v31  ;;  %v2521_v21 = vadd.f32 %v4713_v14, %v2482_v15  ;;  %v2508_v56 = vrot.slane %v2507_v46, 1  ;;  %v3973_v23 = vadd.f32 %v6771_v19, %v3940_v22 }
 0x1f3   :  { %v3948_v55 = vsel %vm2437_vm11, %v3880_v12, -inf  ;;  %v2522_v0 = vadd.f32 %v4713_v14, %v2491_v49  ;;  %v3960_v41 = vrot.slane %v3959_v6, 1  ;;  %v4003_v37 = vsel %vm4002_vm13, %v4001_v1, %v3977_v18 }
 0x1f4   :  { %v3949_v20 = vrot.slane %v3948_v55, 4  ;;  %v2523_v48 = vadd.f32 %v4713_v14, %v2500_v25  ;;  %v2509_v52 = vmax.f32 %v2507_v46, %v2508_v56  ;;  %v2528_v26 = vmax.f32 %v2520_v44, 0.0  ;;  %v4233_v25 = vld [vmem:[%s7030_s9 + $0x38] sm:$0xff]  ;;  %v3985_v56 = vld [vmem:[%s7027_s6] sm:$0xff] }
 0x1f5   :  { %v2529_v53 = vmax.f32 %v2521_v21, 0.0  ;;  %v3974_v3 = vadd.f32 %v6771_v19, %v3947_v60  ;;  %v2530_v7 = vmax.f32 %v2522_v0, 0.0  ;;  %v3961_v30 = vmax.f32 %v3959_v6, %v3960_v41  ;;  %v3988_v6 = vld [vmem:[%s7027_s6 + $0x18] sm:$0xff]  ;;  %v3987_v21 = vld [vmem:[%s7027_s6 + $0x10] sm:$0xff]  ;;  %v4226_v0 = vld [vmem:[%s7030_s9] sm:$0xff] }
 0x1f6   :  { %v3950_v39 = vmax.f32 %v3948_v55, %v3949_v20  ;;  %v2524_v32 = vadd.f32 %v4713_v14, %v2509_v52  ;;  %v2531_v33 = vmax.f32 %v2523_v48, 0.0  ;;  %v7591_v63 = vmax.f32 %v7590_v45, 0.0  ;;  %v3986_v55 = vld [vmem:[%s7027_s6 + $0x8] sm:$0xff]  ;;  %v4230_v41 = vld [vmem:[%s7030_s9 + $0x20] sm:$0xff] }
 0x1f7   :  { %v3981_v50 = vmax.f32 %v3973_v23, 0.0  ;;  %v7594_v58 = vmax.f32 %v7593_v57, 0.0  ;;  %v4103_v51 = vrot.slane %v2528_v26, 5  ;;  %v4105_v24 = vrot.slane %v2529_v53, 4  ;;  %v4227_v23 = vld [vmem:[%s7030_s9 + $0x8] sm:$0xff] }
 0x1f8   :  { %v4100_v54 = vsel %vm4002_vm13, %v7592_v42, %v7591_v63  ;;  %v3951_v35 = vrot.slane %v3950_v39, 2  ;;  %v2532_v61 = vmax.f32 %v2524_v32, 0.0  ;;  %v4107_v34 = vrot.slane %v2530_v7, 3  ;;  %v4304_v20 = vld [vmem:[#allocation2] sm:$0x1] }
 0x1f9   :  { %v4101_v16 = vrot.slane %v7594_v58, 6  ;;  %v3982_v10 = vmax.f32 %v3974_v3, 0.0  ;;  %v4109_v4 = vrot.slane %v2531_v33, 2  ;;  %v3976_v28 = vadd.f32 %v6771_v19, %v3961_v30  ;;  %v4445_v26 = vld [vmem:[%s7029_s8] ss:$0 sm:$0xff]  ;;  %s4740_s8 = smov [#allocation3]  }
 0x1fa   :  { %v3952_v17 = vmax.f32 %v3950_v39, %v3951_v35  ;;  %v4111_v15 = vrot.slane %v2532_v61, 1  ;;  %v4739_v62 = vmov 0   ;;  %v4005_v29 = vsel %vm1687_vm5, %v6924_v8, %v4003_v37  ;;  %v4231_v8 = vld [vmem:[%s7030_s9 + $0x28] sm:$0xff] }
 0x1fb   :  { %v4102_v2 = vsel %vm1687_vm5, %v4101_v16, %v4100_v54  ;;  %4712 = vset.pattern.permute.xlu1 %v4739_v62  ;;  %4711 = vset.pattern.permute.xlu0 %v4739_v62  ;;  %v4009_v59 = vrot.slane %v3981_v50, 4  ;;  %v3984_v36 = vmax.f32 %v3976_v28, 0.0  ;;  %v4008_v27 = vsel %vm4007_vm14, %v4006_v9, %v4005_v29 }
 0x1fc   :  { %v4104_v38 = vsel %vm4007_vm14, %v4103_v51, %v4102_v2  ;;  %v3953_v18 = vrot.slane %v3952_v17, 1  ;;  %4246 = vperm.xlu1 %4712, %v4228_v43   ;;  %v4011_v49 = vrot.slane %v3982_v10, 3  ;;  %4236 = vperm.xlu0 %4711, %v4226_v0  }
 0x1fd   :  { %v4106_v47 = vsel %vm1689_vm6, %v4105_v24, %v4104_v38  ;;  %v4010_v14 = vsel %vm1689_vm6, %v4009_v59, %v4008_v27  ;;  %v4016_v44 = vrot.slane %v3984_v36, 1 }
 0x1fe   :  { %v4108_v11 = vsel %vm4012_vm15, %v4107_v34, %v4106_v47  ;;  %v3954_v1 = vmax.f32 %v3952_v17, %v3953_v18  ;;  %v4013_v40 = vsel %vm4012_vm15, %v4011_v49, %v4010_v14 }
 0x1ff   :  { %v4110_v22 = vsel %vm1691_vm7, %v4109_v4, %v4108_v11 }
 0x200   :  { %v4112_v31 = vsel %vm4017_vm0, %v4111_v15, %v4110_v22  ;;  %v3975_v12 = vadd.f32 %v6771_v19, %v3954_v1  ;;  %4251 = vperm.xlu1 %4712, %v4229_v13   ;;  %4241 = vperm.xlu0 %4711, %v4227_v23  }
 0x202   :  { %v3983_v46 = vmax.f32 %v3975_v12, 0.0 }
 0x204   :  { %v4014_v60 = vrot.slane %v3983_v46, 2  ;;  %4261 = vperm.xlu1 %4712, %v4231_v8   ;;  %4256 = vperm.xlu0 %4711, %v4230_v41  }
 0x206   :  { %v4015_v9 = vsel %vm1691_vm7, %v4014_v60, %v4013_v40 }
 0x207   :  { %v4018_v19 = vsel %vm4017_vm0, %v4016_v44, %v4015_v9  ;;  %v7595_v44 = vld [vmem:[#allocation6_spill] sm:$0xff] }
 0x208   :  { %4693 = vmatmul.mubr.msk.f32.vlgmr.msra.gmra.mxu1 %vm2437_vm11, %v4018_v19  ;;  %4271 = vperm.xlu1 %4712, %v4233_v25   ;;  %v4312_v60 = vsub.s32 0, %v7595_v44 }
 0x209   :  { %4696 = vmatpush3.msra.mxu1 %v3988_v6  ;;  %4703 = vmatprep.mubr.msk.f32.mxu1 %vm4738_vm12, %v4737_v5 }
 0x20a   :  { %4697 = vmatprep.subr.mxu1 %v4737_v5 }
 0x20b   :  { %4698 = vmatpush3.msra.mxu1 %v3987_v21 }
 0x20c   :  { %4699 = vmatprep.subr.mxu1 %v4737_v5 }
 0x20d   :  { %4700 = vmatpush3.msra.mxu1 %v3986_v55 }
 0x20e   :  { %4701 = vmatprep.subr.mxu1 %v4737_v5  ;;  %v4232_v5 = vld [vmem:[%s7030_s9 + $0x30] sm:$0xff]  ;;  %s4323_s9 = sshll.u32 %s4740_s8, 4  ;;  %s4324_s9 = int_to_ptr.vmem [resolvable:$true] %s4323_s9 }
 0x20f   :  { %4702 = vmatpush3.msra.mxu1 %v3985_v56  ;;  %4266 = vperm.xlu0 %4711, %v4232_v5   ;;  %s4714_s7 = scalar_lea.vmem %s4324_s9, 16  ;;  %s4718_s28 = scalar_lea.vmem %s4324_s9, 32 }
 0x210   :  { %4704 = vmatmul.mubr.msk.f32.vlgmr.msra.gmra.mxu1 %vm2437_vm11, %v4112_v31  ;;  %p4715_p0 = scmp.ne.s32.totalorder %s4324_s9, %s4714_s7  ;;  %p4719_p1 = scmp.lt.s32.totalorder %s4324_s9, %s4324_s9 }
 0x211   :  { %p4720_p2 = scmp.lt.s32.totalorder %s4718_s28, %s4714_s7 }
 0x213   :  { %4307 = vperm.xlu0 %4711, %v4304_v20   ;;  %p4721_p3 = por %p4720_p2, %p4719_p1 }
 0x215   :  { %p4722_p4 = pnand %p4721_p3, %p4715_p0 }
 0x277   :  { %v4247_v30 = vpop.permute.xlu1 %4246  ;;  %v4237_v54 = vpop.permute.xlu0 %4236 }
 0x27b   :  { %v4252_v32 = vpop.permute.xlu1 %4251  ;;  %v4242_v35 = vpop.permute.xlu0 %4241 }
 0x27f   :  { %v4262_v33 = vpop.permute.xlu1 %4261  ;;  %v4257_v17 = vpop.permute.xlu0 %4256 }
 0x283   :  { %v4272_v45 = vpop.permute.xlu1 %4271 }
 0x28a   :  { %v4267_v62 = vpop.permute.xlu0 %4266 }
 0x28e   :  { %v4308_v6 = vpop.permute.xlu0 %4307 }
 0x28f   :  { %v4313_v25 = vrot.slane %v4308_v6, %v4312_v60 }
 0x2c8   :  { %v4087_v48 = vpop.f32.mrf.mxu1 }
 0x2ca   :  { %v4694_v37 = vpop.f32.mrf.mxu1 }
 0x2d0   :  { %v4181_v52 = vpop.f32.mrf.mxu1 }
 0x2d1   :  { %v4182_v53 = vadd.f32 %v4181_v52, %v4087_v48 }
 0x2d2   :  { %v4705_v39 = vpop.f32.mrf.mxu1 }
 0x2d3   :  { %v4192_v3 = vadd.f32 %v4445_v26, %v4182_v53 }
 0x2d5   :  { %v4193_v7 = vmax.f32 %v4192_v3, 0.0 }
 0x2d7   :  { %4194 = vxpose.xlu1.b32.start.end [1/1] (short) (narrow) %v4193_v7, 64 }
 0x353   :  { %v4210_v63 = vpop.trf.xlu1 }
 0x354   :  { %v4274_v16 = vmul.f32 %v4237_v54, %v4210_v63 }
 0x356   :  { %v4283_v10 = vsel %vm4282_vm1, %v4274_v16, 0.0 }
 0x357   :  { %v4211_v42 = vpop.trf.xlu1 }
 0x358   :  { %v4275_v58 = vmul.f32 %v4242_v35, %v4211_v42 }
 0x35a   :  { %v4284_v24 = vsel %vm4282_vm1, %v4275_v58, 0.0 }
 0x35b   :  { %v4212_v50 = vpop.trf.xlu1  ;;  %v4285_v43 = vadd.f32 %v4284_v24, %v4283_v10 }
 0x35c   :  { %v4276_v61 = vmul.f32 %v4247_v30, %v4212_v50 }
 0x35e   :  { %v4286_v2 = vsel %vm4282_vm1, %v4276_v61, 0.0 }
 0x35f   :  { %v4213_v57 = vpop.trf.xlu1  ;;  %v4287_v18 = vadd.f32 %v4286_v2, %v4285_v43 }
 0x360   :  { %v4277_v34 = vmul.f32 %v4252_v32, %v4213_v57 }
 0x362   :  { %v4288_v38 = vsel %vm4282_vm1, %v4277_v34, 0.0 }
 0x363   :  { %v4214_v51 = vpop.trf.xlu1  ;;  %v4289_v11 = vadd.f32 %v4288_v38, %v4287_v18 }
 0x364   :  { %v4278_v4 = vmul.f32 %v4257_v17, %v4214_v51 }
 0x366   :  { %v4290_v47 = vsel %vm4282_vm1, %v4278_v4, 0.0 }
 0x367   :  { %v4215_v28 = vpop.trf.xlu1  ;;  %v4291_v22 = vadd.f32 %v4290_v47, %v4289_v11 }
 0x368   :  { %v4279_v15 = vmul.f32 %v4262_v33, %v4215_v28 }
 0x36a   :  { %v4292_v29 = vsel %vm4282_vm1, %v4279_v15, 0.0 }
 0x36b   :  { %v4216_v1 = vpop.trf.xlu1  ;;  %v4293_v36 = vadd.f32 %v4292_v29, %v4291_v22 }
 0x36c   :  { %v4280_v59 = vmul.f32 %v4267_v62, %v4216_v1 }
 0x36e   :  { %v4294_v13 = vsel %vm4282_vm1, %v4280_v59, 0.0 }
 0x36f   :  { %v4217_v27 = vpop.trf.xlu1  ;;  %v4295_v31 = vadd.f32 %v4294_v13, %v4293_v36 }
 0x370   :  { %v4281_v49 = vmul.f32 %v4272_v45, %v4217_v27 }
 0x372   :  { %v4296_v12 = vsel %vm4282_vm1, %v4281_v49, 0.0 }
 0x373   :  { %v4297_v46 = vadd.f32 %v4296_v12, %v4295_v31 }
 0x375   :  { %v4298_v14 = vrot.slane %v4297_v46, 4 }
 0x377   :  { %v4299_v8 = vadd.f32 %v4298_v14, %v4297_v46 }
 0x379   :  { %v4300_v40 = vrot.slane %v4299_v8, 2 }
 0x37b   :  { %v4301_v9 = vadd.f32 %v4300_v40, %v4299_v8 }
 0x37d   :  { %v4302_v19 = vrot.slane %v4301_v9, 1 }
 0x37f   :  { %v4303_v21 = vadd.f32 %v4302_v19, %v4301_v9 }
 0x381   :  { %v4314_v55 = vadd.f32 %v4313_v25, %v4303_v21 }
 0x383   :  { %4316 = vst.msk [vmem:[#allocation3] sm:$0x1] %vm4315_vm2, %v4314_v55 }
 0x384   :  { %4725 = shalt.err (!%p4722_p4)
}
 0x385   :  { %4326 = dma.vmem_to_hbm [thread:$0]  %s4324_s9, 16, %s7032_s11, [#allocation4]  }
 0x386   :  { %4734 = dma.done.wait [#allocation4], 16  }
 0x387   :  { %4735 = vsyncadd [#allocation4], 4294967280 }
 0x388   :  { %4330 = vsyncpa [#allocation4], 1 }

</bundles_post_ra>
